<compile_context>
chip_gen: v6e
topology: v6e:2x2x1
jax: 0.10.0
libtpu: 0.0.40
codegen_flags: <defaults>
</compile_context>

<pallas_src>
import functools

import jax
import jax.numpy as jnp
from jax import lax
from jax.experimental import pallas as pl
from jax.experimental.pallas import tpu as pltpu


# ---------------------------------------------------------------------------
# Fused kernel: encoder BiLSTM -> mean/log_var/reparam/hidden_decoder ->
#               decoder BiLSTM.
# Gate column layout (width 8H): [i_f i_b f_f f_b g_f g_b o_f o_b], each H wide.
# Fused state layout (width 2H): [fwd | bwd].
# Latent column layout (width 4L): [m_f m_b lv_f lv_b], each L wide.
# ---------------------------------------------------------------------------
def _bilstm_vae_kernel(T, B, H, L,
                       x_ref,                       # (T*B, D) bf16, time-major
                       ewih_ref, dwih_ref,          # (D, 8H) bf16 packed W_ih
                       eb_ref, db_ref,              # (1, 8H) f32 packed biases
                       ewhh_ref, dwhh_ref,          # (2H, 8H) bf16 blk-diag W_hh
                       h0_ref, c0_ref,              # (B, 2H) f32 initial states
                       gauss_ref,                   # (B, 1) f32 noise
                       wml_ref, bml_ref,            # (2H, 4L) bf16, (1, 4L) f32
                       wd_ref, bd_ref,              # (2L, 2H) bf16, (1, 2H) f32
                       pred_ref,                    # (B, T*2H) f32 output slab
                       misc_ref,                    # (B, 4L+4H) f32 output slab
                       egx_sc, dgx_sc):             # VMEM (T*B, 8H) f32 scratch
    twoH = 2 * H
    G = 8 * H
    bf16 = jnp.bfloat16

    # Hoisted lane masks (dir0 columns of every gate block / of the state).
    lane_g = lax.broadcasted_iota(jnp.int32, (B, G), 1)
    fwd_mask_g = (lane_g % twoH) < H
    lane_h = lax.broadcasted_iota(jnp.int32, (B, twoH), 1)
    fwd_mask_h = lane_h < H

    x = x_ref[...]                                       # (T*B, D) bf16

    # Both input projections up front (decoder's is independent of the encoder
    # recurrence, so its MXU pushes hide under the encoder loop's bubbles).
    egx_sc[...] = (jnp.dot(x, ewih_ref[...],
                           preferred_element_type=jnp.float32) + eb_ref[...])
    dgx_sc[...] = (jnp.dot(x, dwih_ref[...],
                           preferred_element_type=jnp.float32) + db_ref[...])

    def run_recurrence(gx_ref, whh_ref, h0, c0, collect):
        whh = whh_ref[...]                               # (2H, 8H) bf16
        # Hoisted fwd/bwd time mix: step body stays dot+add+nonlinearity only.
        gxm = []
        for s in range(T):                               # outside the recurrence
            gx_f = gx_ref[s * B:(s + 1) * B, :]          # x-gates @ time s
            gx_b = gx_ref[(T - 1 - s) * B:(T - s) * B, :]  # x-gates @ T-1-s
            gxm.append(jnp.where(fwd_mask_g, gx_f, gx_b))
        h, c = h0, c0                                    # (B, 2H) f32 each
        outs = []
        for s in range(T):                               # fully unrolled
            gates = gxm[s] + jnp.dot(h.astype(bf16), whh,
                                     preferred_element_type=jnp.float32)
            sig = jax.nn.sigmoid(gates)                  # full-vreg EUP, f32
            tnh = jnp.tanh(gates)
            i_g = sig[:, 0 * twoH:1 * twoH]
            f_g = sig[:, 1 * twoH:2 * twoH]
            g_g = tnh[:, 2 * twoH:3 * twoH]
            o_g = sig[:, 3 * twoH:4 * twoH]
            c = f_g * c + i_g * g_g
            h = o_g * jnp.tanh(c)
            if collect:
                outs.append(h)
        return h, c, outs

    # -------------------- encoder (final states only) ----------------------
    h_enc, c_enc, _ = run_recurrence(egx_sc, ewhh_ref,
                                     h0_ref[...], c0_ref[...], False)

    # -------------------- latent path, fused across directions -------------
    mlv = (jnp.dot(h_enc.astype(bf16), wml_ref[...],
                   preferred_element_type=jnp.float32) + bml_ref[...])  # (B,4L)
    m = mlv[:, :2 * L]                                   # [m_f  | m_b ]
    lv = mlv[:, 2 * L:]                                  # [lv_f | lv_b]
    z = gauss_ref[...] * jnp.exp(0.5 * lv) + m           # (B, 2L), f32 EUP
    h0d = (jnp.dot(z.astype(bf16), wd_ref[...],
                   preferred_element_type=jnp.float32) + bd_ref[...])   # (B,2H)

    # One lane-dense stats slab: [m_f m_b lv_f lv_b | hn_f hn_b | cn_f cn_b].
    misc_ref[...] = jnp.concatenate([mlv, h_enc, c_enc], axis=-1)

    # -------------------- decoder (output sequence only) -------------------
    # PyTorch: decoder initial (h0, c0) = (hidden_decoder, hidden_decoder).
    _, _, outs = run_recurrence(dgx_sc, dwhh_ref, h0d, h0d, True)
    # Output time t: fwd hidden from iter t, bwd hidden from iter T-1-t,
    # combined with a full-vreg lane-mask select (no slices / concats per dir).
    pred_parts = [jnp.where(fwd_mask_h, outs[t], outs[T - 1 - t])
                  for t in range(T)]
    pred_ref[...] = jnp.concatenate(pred_parts, axis=-1)  # (B, T*2H) lane-dense


# ---------------------------------------------------------------------------
# Wrapper: one pallas_call for the whole forward pass; all (2,B,H)<->(B,2H)
# layout plumbing and slab splitting lives out here.
# ---------------------------------------------------------------------------
def bilstm_vae_forward(params, sentence, h0, c0, gauss):
    # sentence: (B, T, D) batch_first; h0/c0: (2, B, H); gauss: (B, 1)
    B, T, D = sentence.shape
    H = D // 2
    twoH = 2 * H
    L = params["wd_blk"].shape[0] // 2

    # Tiny layout plumbing kept in the wrapper on purpose (KB-scale arrays).
    x_flat = (jnp.transpose(sentence, (1, 0, 2))
              .reshape(T * B, D).astype(jnp.bfloat16))
    h0p = jnp.transpose(h0, (1, 0, 2)).reshape(B, twoH)      # (B, 2H)
    c0p = jnp.transpose(c0, (1, 0, 2)).reshape(B, twoH)

    vmem = pl.BlockSpec(memory_space=pltpu.MemorySpace.VMEM)
    kernel = functools.partial(_bilstm_vae_kernel, T, B, H, L)

    pred_slab, misc = pl.pallas_call(
        kernel,
        out_shape=(jax.ShapeDtypeStruct((B, T * twoH), jnp.float32),
                   jax.ShapeDtypeStruct((B, 4 * L + 4 * H), jnp.float32)),
        in_specs=[vmem] * 14,
        out_specs=(vmem, vmem),
        scratch_shapes=[pltpu.VMEM((T * B, 8 * H), jnp.float32),
                        pltpu.VMEM((T * B, 8 * H), jnp.float32)],
    )(x_flat,
      params["enc_wih"], params["dec_wih"],
      params["enc_b"], params["dec_b"],
      params["enc_whh"], params["dec_whh"],
      h0p, c0p, gauss,
      params["wml_blk"], params["bml_blk"],
      params["wd_blk"], params["bd_blk"])

    predictions = pred_slab.reshape(B, T, twoH)               # (B, T, D)
    mean = jnp.stack([misc[:, 0:L], misc[:, L:2 * L]], axis=0)          # (2,B,L)
    log_var = jnp.stack([misc[:, 2 * L:3 * L], misc[:, 3 * L:4 * L]], axis=0)
    off = 4 * L
    hn = jnp.stack([misc[:, off:off + H], misc[:, off + H:off + 2 * H]], axis=0)
    cn = jnp.stack([misc[:, off + 2 * H:off + 3 * H],
                    misc[:, off + 3 * H:off + 4 * H]], axis=0)
    return predictions, mean, log_var, (hn, cn)


# ---------------------------------------------------------------------------
# Parameter init: PyTorch-style uniform(-1/sqrt(fan)), packed into the fused
# gate-grouped / block-diagonal layouts used by the kernel (MXU operands bf16).
# ---------------------------------------------------------------------------
def _pack_bilstm(wih, whh, bih, bhh):
    # wih: (2, 4H, D), whh: (2, 4H, H), bih/bhh: (2, 4H), PyTorch [i,f,g,o].
    H = whh.shape[-1]
    wih_t = jnp.transpose(wih, (0, 2, 1))      # (2, D, 4H)
    whh_t = jnp.transpose(whh, (0, 2, 1))      # (2, H, 4H)
    b = bih + bhh                               # (2, 4H)
    zeros = jnp.zeros((H, H), jnp.float32)
    cols_ih, cols_hh, cols_b = [], [], []
    for g in range(4):                          # gate-grouped columns
        sl = slice(g * H, (g + 1) * H)
        cols_ih += [wih_t[0][:, sl], wih_t[1][:, sl]]
        cols_hh += [jnp.concatenate([whh_t[0][:, sl], zeros], axis=0),
                    jnp.concatenate([zeros, whh_t[1][:, sl]], axis=0)]
        cols_b += [b[0, sl], b[1, sl]]
    wih_comb = jnp.concatenate(cols_ih, axis=1).astype(jnp.bfloat16)  # (D, 8H)
    whh_blk = jnp.concatenate(cols_hh, axis=1).astype(jnp.bfloat16)   # (2H, 8H)
    b_comb = jnp.concatenate(cols_b, axis=0)[None, :]                  # (1, 8H) f32
    return wih_comb, whh_blk, b_comb


def init_params(key, D, L):
    H = D // 2
    k_lstm = 1.0 / (H ** 0.5)
    k_lin_h = 1.0 / (H ** 0.5)   # _mean / _log_var: in_features = H (num_layers=1)
    k_lin_l = 1.0 / (L ** 0.5)   # _hidden_decoder: in_features = L

    def uni(k, shape, scale):
        return jax.random.uniform(k, shape, jnp.float32, -scale, scale)

    keys = jax.random.split(key, 14)
    params = {}
    for prefix, kk in (("enc", keys[0:4]), ("dec", keys[4:8])):
        wih = uni(kk[0], (2, 4 * H, D), k_lstm)   # weight_ih_l0 / _reverse
        whh = uni(kk[1], (2, 4 * H, H), k_lstm)   # weight_hh_l0 / _reverse
        bih = uni(kk[2], (2, 4 * H), k_lstm)
        bhh = uni(kk[3], (2, 4 * H), k_lstm)
        wih_c, whh_c, b_c = _pack_bilstm(wih, whh, bih, bhh)
        params[prefix + "_wih"] = wih_c
        params[prefix + "_whh"] = whh_c
        params[prefix + "_b"] = b_c

    # _mean / _log_var fused into one block-diagonal (2H, 4L): [m_f m_b lv_f lv_b]
    wm = uni(keys[8], (H, L), k_lin_h)            # _mean.weight.T
    bm = uni(keys[9], (1, L), k_lin_h)
    wv = uni(keys[10], (H, L), k_lin_h)           # _log_var.weight.T
    bv = uni(keys[11], (1, L), k_lin_h)
    zHL = jnp.zeros((H, L), jnp.float32)
    wml_blk = jnp.concatenate(
        [jnp.concatenate([wm, zHL, wv, zHL], axis=1),     # fwd rows
         jnp.concatenate([zHL, wm, zHL, wv], axis=1)],    # bwd rows
        axis=0)                                            # (2H, 4L)
    params["wml_blk"] = wml_blk.astype(jnp.bfloat16)
    params["bml_blk"] = jnp.concatenate([bm, bm, bv, bv], axis=1)   # (1, 4L)

    # _hidden_decoder fused into block-diagonal (2L, 2H): [hd_f | hd_b]
    wd = uni(keys[12], (L, H), k_lin_l)           # _hidden_decoder.weight.T
    bd = uni(keys[13], (1, H), k_lin_l)
    zLH = jnp.zeros((L, H), jnp.float32)
    wd_blk = jnp.concatenate(
        [jnp.concatenate([wd, zLH], axis=1),
         jnp.concatenate([zLH, wd], axis=1)],
        axis=0)                                            # (2L, 2H)
    params["wd_blk"] = wd_blk.astype(jnp.bfloat16)
    params["bd_blk"] = jnp.concatenate([bd, bd], axis=1)   # (1, 2H)
    return params


if __name__ == "__main__":
    B, T, D, L = 2, 8, 32, 16      # batch, seq, hidden_dim, latent_dim
    H = D // 2                     # LSTM hidden size per direction

    root = jax.random.PRNGKey(0)
    kp, kx, kh, kc, kg = jax.random.split(root, 5)

    params = init_params(kp, D, L)
    sentence = jax.random.normal(kx, (B, T, D), jnp.float32)
    h0 = jax.random.normal(kh, (2, B, H), jnp.float32)
    c0 = jax.random.normal(kc, (2, B, H), jnp.float32)
    gauss = jax.random.normal(kg, (B, 1), jnp.float32)   # torch.randn(batch, num_layers=1)

    fwd = jax.jit(bilstm_vae_forward)
    predictions, mean, log_var, (hn, cn) = fwd(params, sentence, h0, c0, gauss)
    jax.block_until_ready((predictions, mean, log_var, hn, cn))

    assert predictions.shape == (B, T, D)
    assert mean.shape == (2, B, L) and log_var.shape == (2, B, L)
    assert hn.shape == (2, B, H) and cn.shape == (2, B, H)
    print("KERNEL_OK")
</pallas_src>

<mosaic_0001>
module attributes {stable_mosaic.version = 11 : i64} {
  func.func @_bilstm_vae_kernel(%arg0: memref<16x32xbf16, #tpu.memory_space<vmem>>, %arg1: memref<32x128xbf16, #tpu.memory_space<vmem>>, %arg2: memref<32x128xbf16, #tpu.memory_space<vmem>>, %arg3: memref<1x128xf32, #tpu.memory_space<vmem>>, %arg4: memref<1x128xf32, #tpu.memory_space<vmem>>, %arg5: memref<32x128xbf16, #tpu.memory_space<vmem>>, %arg6: memref<32x128xbf16, #tpu.memory_space<vmem>>, %arg7: memref<2x32xf32, #tpu.memory_space<vmem>>, %arg8: memref<2x32xf32, #tpu.memory_space<vmem>>, %arg9: memref<2x1xf32, #tpu.memory_space<vmem>>, %arg10: memref<32x64xbf16, #tpu.memory_space<vmem>>, %arg11: memref<1x64xf32, #tpu.memory_space<vmem>>, %arg12: memref<32x32xbf16, #tpu.memory_space<vmem>>, %arg13: memref<1x32xf32, #tpu.memory_space<vmem>>, %arg14: memref<2x256xf32, #tpu.memory_space<vmem>>, %arg15: memref<2x128xf32, #tpu.memory_space<vmem>>, %arg16: memref<16x128xf32, #tpu.memory_space<vmem>>, %arg17: memref<16x128xf32, #tpu.memory_space<vmem>>) attributes {dimension_semantics = [], scalar_prefetch = 0 : i64, scratch_operands = 2 : i64, tpu.core_type = #tpu.core_type<tc>} {
    %0 = tpu.iota {dimensions = array<i32: 1>} : vector<2x128xi32>
    %c32_i32 = arith.constant 32 : i32
    %c0_i32 = arith.constant 0 : i32
    %1 = arith.cmpi eq, %c32_i32, %c0_i32 : i32
    %c1_i32 = arith.constant 1 : i32
    %2 = arith.select %1, %c1_i32, %c32_i32 : i32
    %3 = vector.broadcast %2 : i32 to vector<2x128xi32>
    %4 = arith.remsi %0, %3 : vector<2x128xi32>
    %c0_i32_0 = arith.constant 0 : i32
    %5 = vector.broadcast %c0_i32_0 : i32 to vector<2x128xi32>
    %6 = arith.cmpi ne, %4, %5 : vector<2x128xi32>
    %c0_i32_1 = arith.constant 0 : i32
    %7 = vector.broadcast %c0_i32_1 : i32 to vector<2x128xi32>
    %8 = arith.cmpi slt, %4, %7 : vector<2x128xi32>
    %c0_i32_2 = arith.constant 0 : i32
    %9 = arith.cmpi slt, %2, %c0_i32_2 : i32
    %10 = vector.broadcast %9 : i1 to vector<2x128xi1>
    %11 = vector.broadcast %10 : vector<2x128xi1> to vector<2x128xi1>
    %12 = arith.xori %8, %11 : vector<2x128xi1>
    %13 = arith.andi %12, %6 : vector<2x128xi1>
    %14 = vector.broadcast %2 : i32 to vector<2x128xi32>
    %15 = arith.addi %4, %14 : vector<2x128xi32>
    %16 = arith.select %13, %15, %4 : vector<2x128xi1>, vector<2x128xi32>
    %c16_i32 = arith.constant 16 : i32
    %17 = vector.broadcast %c16_i32 : i32 to vector<2x128xi32>
    %18 = arith.cmpi slt, %16, %17 : vector<2x128xi32>
    %19 = tpu.iota {dimensions = array<i32: 1>} : vector<2x32xi32>
    %c16_i32_3 = arith.constant 16 : i32
    %20 = vector.broadcast %c16_i32_3 : i32 to vector<2x32xi32>
    %21 = arith.cmpi slt, %19, %20 : vector<2x32xi32>
    %c0 = arith.constant 0 : index
    %c0_4 = arith.constant 0 : index
    %22 = vector.load %arg0[%c0, %c0_4] : memref<16x32xbf16, #tpu.memory_space<vmem>>, vector<16x32xbf16>
    %c0_5 = arith.constant 0 : index
    %c0_6 = arith.constant 0 : index
    %23 = vector.load %arg1[%c0_5, %c0_6] : memref<32x128xbf16, #tpu.memory_space<vmem>>, vector<32x128xbf16>
    %cst = arith.constant dense<0.000000e+00> : vector<16x128xf32>
    %24 = tpu.matmul %22, %23, %cst {dimension_numbers = #tpu.dot_dimension_numbers<[1], [0], [0], [1], [0, 0, 1, 1], [], []>} : vector<16x32xbf16>, vector<32x128xbf16>, vector<16x128xf32> -> vector<16x128xf32>
    %c0_7 = arith.constant 0 : index
    %c0_8 = arith.constant 0 : index
    %25 = vector.load %arg3[%c0_7, %c0_8] : memref<1x128xf32, #tpu.memory_space<vmem>>, vector<1x128xf32>
    %26 = vector.broadcast %25 : vector<1x128xf32> to vector<16x128xf32>
    %27 = arith.addf %24, %26 : vector<16x128xf32>
    %c0_9 = arith.constant 0 : index
    %c0_10 = arith.constant 0 : index
    %28 = vector.load %arg16[%c0_9, %c0_10] : memref<16x128xf32, #tpu.memory_space<vmem>>, vector<16x128xf32>
    tpu.vector_store %arg16[%c0_9, %c0_10], %27 {strides = array<i32>} : memref<16x128xf32, #tpu.memory_space<vmem>>, vector<16x128xf32>,
    %c0_11 = arith.constant 0 : index
    %c0_12 = arith.constant 0 : index
    %29 = vector.load %arg2[%c0_11, %c0_12] : memref<32x128xbf16, #tpu.memory_space<vmem>>, vector<32x128xbf16>
    %cst_13 = arith.constant dense<0.000000e+00> : vector<16x128xf32>
    %30 = tpu.matmul %22, %29, %cst_13 {dimension_numbers = #tpu.dot_dimension_numbers<[1], [0], [0], [1], [0, 0, 1, 1], [], []>} : vector<16x32xbf16>, vector<32x128xbf16>, vector<16x128xf32> -> vector<16x128xf32>
    %c0_14 = arith.constant 0 : index
    %c0_15 = arith.constant 0 : index
    %31 = vector.load %arg4[%c0_14, %c0_15] : memref<1x128xf32, #tpu.memory_space<vmem>>, vector<1x128xf32>
    %32 = vector.broadcast %31 : vector<1x128xf32> to vector<16x128xf32>
    %33 = arith.addf %30, %32 : vector<16x128xf32>
    %c0_16 = arith.constant 0 : index
    %c0_17 = arith.constant 0 : index
    %34 = vector.load %arg17[%c0_16, %c0_17] : memref<16x128xf32, #tpu.memory_space<vmem>>, vector<16x128xf32>
    tpu.vector_store %arg17[%c0_16, %c0_17], %33 {strides = array<i32>} : memref<16x128xf32, #tpu.memory_space<vmem>>, vector<16x128xf32>,
    %c0_18 = arith.constant 0 : index
    %c0_19 = arith.constant 0 : index
    %35 = vector.load %arg7[%c0_18, %c0_19] : memref<2x32xf32, #tpu.memory_space<vmem>>, vector<2x32xf32>
    %c0_20 = arith.constant 0 : index
    %c0_21 = arith.constant 0 : index
    %36 = vector.load %arg8[%c0_20, %c0_21] : memref<2x32xf32, #tpu.memory_space<vmem>>, vector<2x32xf32>
    %c0_22 = arith.constant 0 : index
    %c0_23 = arith.constant 0 : index
    %37 = vector.load %arg5[%c0_22, %c0_23] : memref<32x128xbf16, #tpu.memory_space<vmem>>, vector<32x128xbf16>
    %c0_24 = arith.constant 0 : index
    %c0_25 = arith.constant 0 : index
    %38 = vector.load %arg16[%c0_24, %c0_25] : memref<16x128xf32, #tpu.memory_space<vmem>>, vector<2x128xf32>
    %c14 = arith.constant 14 : index
    %c0_26 = arith.constant 0 : index
    %39 = vector.load %arg16[%c14, %c0_26] : memref<16x128xf32, #tpu.memory_space<vmem>>, vector<2x128xf32>
    %40 = arith.select %18, %38, %39 : vector<2x128xi1>, vector<2x128xf32>
    %c2 = arith.constant 2 : index
    %c0_27 = arith.constant 0 : index
    %41 = vector.load %arg16[%c2, %c0_27] : memref<16x128xf32, #tpu.memory_space<vmem>>, vector<2x128xf32>
    %c12 = arith.constant 12 : index
    %c0_28 = arith.constant 0 : index
    %42 = vector.load %arg16[%c12, %c0_28] : memref<16x128xf32, #tpu.memory_space<vmem>>, vector<2x128xf32>
    %43 = arith.select %18, %41, %42 : vector<2x128xi1>, vector<2x128xf32>
    %c4 = arith.constant 4 : index
    %c0_29 = arith.constant 0 : index
    %44 = vector.load %arg16[%c4, %c0_29] : memref<16x128xf32, #tpu.memory_space<vmem>>, vector<2x128xf32>
    %c10 = arith.constant 10 : index
    %c0_30 = arith.constant 0 : index
    %45 = vector.load %arg16[%c10, %c0_30] : memref<16x128xf32, #tpu.memory_space<vmem>>, vector<2x128xf32>
    %46 = arith.select %18, %44, %45 : vector<2x128xi1>, vector<2x128xf32>
    %c6 = arith.constant 6 : index
    %c0_31 = arith.constant 0 : index
    %47 = vector.load %arg16[%c6, %c0_31] : memref<16x128xf32, #tpu.memory_space<vmem>>, vector<2x128xf32>
    %c8 = arith.constant 8 : index
    %c0_32 = arith.constant 0 : index
    %48 = vector.load %arg16[%c8, %c0_32] : memref<16x128xf32, #tpu.memory_space<vmem>>, vector<2x128xf32>
    %49 = arith.select %18, %47, %48 : vector<2x128xi1>, vector<2x128xf32>
    %c8_33 = arith.constant 8 : index
    %c0_34 = arith.constant 0 : index
    %50 = vector.load %arg16[%c8_33, %c0_34] : memref<16x128xf32, #tpu.memory_space<vmem>>, vector<2x128xf32>
    %c6_35 = arith.constant 6 : index
    %c0_36 = arith.constant 0 : index
    %51 = vector.load %arg16[%c6_35, %c0_36] : memref<16x128xf32, #tpu.memory_space<vmem>>, vector<2x128xf32>
    %52 = arith.select %18, %50, %51 : vector<2x128xi1>, vector<2x128xf32>
    %c10_37 = arith.constant 10 : index
    %c0_38 = arith.constant 0 : index
    %53 = vector.load %arg16[%c10_37, %c0_38] : memref<16x128xf32, #tpu.memory_space<vmem>>, vector<2x128xf32>
    %c4_39 = arith.constant 4 : index
    %c0_40 = arith.constant 0 : index
    %54 = vector.load %arg16[%c4_39, %c0_40] : memref<16x128xf32, #tpu.memory_space<vmem>>, vector<2x128xf32>
    %55 = arith.select %18, %53, %54 : vector<2x128xi1>, vector<2x128xf32>
    %c12_41 = arith.constant 12 : index
    %c0_42 = arith.constant 0 : index
    %56 = vector.load %arg16[%c12_41, %c0_42] : memref<16x128xf32, #tpu.memory_space<vmem>>, vector<2x128xf32>
    %c2_43 = arith.constant 2 : index
    %c0_44 = arith.constant 0 : index
    %57 = vector.load %arg16[%c2_43, %c0_44] : memref<16x128xf32, #tpu.memory_space<vmem>>, vector<2x128xf32>
    %58 = arith.select %18, %56, %57 : vector<2x128xi1>, vector<2x128xf32>
    %c14_45 = arith.constant 14 : index
    %c0_46 = arith.constant 0 : index
    %59 = vector.load %arg16[%c14_45, %c0_46] : memref<16x128xf32, #tpu.memory_space<vmem>>, vector<2x128xf32>
    %c0_47 = arith.constant 0 : index
    %c0_48 = arith.constant 0 : index
    %60 = vector.load %arg16[%c0_47, %c0_48] : memref<16x128xf32, #tpu.memory_space<vmem>>, vector<2x128xf32>
    %61 = arith.select %18, %59, %60 : vector<2x128xi1>, vector<2x128xf32>
    %62 = arith.truncf %35 : vector<2x32xf32> to vector<2x32xbf16>
    %cst_49 = arith.constant dense<0.000000e+00> : vector<2x128xf32>
    %63 = tpu.matmul %62, %37, %cst_49 {dimension_numbers = #tpu.dot_dimension_numbers<[1], [0], [0], [1], [0, 0, 1, 1], [], []>} : vector<2x32xbf16>, vector<32x128xbf16>, vector<2x128xf32> -> vector<2x128xf32>
    %64 = arith.addf %40, %63 : vector<2x128xf32>
    %65 = arith.negf %64 : vector<2x128xf32>
    %66 = math.exp %65 : vector<2x128xf32>
    %cst_50 = arith.constant 1.000000e+00 : f32
    %67 = vector.broadcast %cst_50 : f32 to vector<2x128xf32>
    %68 = arith.addf %67, %66 : vector<2x128xf32>
    %69 = arith.divf %67, %68 : vector<2x128xf32>
    %70 = math.tanh %64 : vector<2x128xf32>
    %71 = vector.extract_strided_slice %69 {offsets = [0, 0], sizes = [2, 32], strides = [1, 1]} : vector<2x128xf32> to vector<2x32xf32>
    %72 = vector.extract_strided_slice %69 {offsets = [0, 32], sizes = [2, 32], strides = [1, 1]} : vector<2x128xf32> to vector<2x32xf32>
    %73 = vector.extract_strided_slice %70 {offsets = [0, 64], sizes = [2, 32], strides = [1, 1]} : vector<2x128xf32> to vector<2x32xf32>
    %74 = vector.extract_strided_slice %69 {offsets = [0, 96], sizes = [2, 32], strides = [1, 1]} : vector<2x128xf32> to vector<2x32xf32>
    %75 = arith.mulf %72, %36 : vector<2x32xf32>
    %76 = arith.mulf %71, %73 : vector<2x32xf32>
    %77 = arith.addf %75, %76 : vector<2x32xf32>
    %78 = math.tanh %77 : vector<2x32xf32>
    %79 = arith.mulf %74, %78 : vector<2x32xf32>
    %80 = arith.truncf %79 : vector<2x32xf32> to vector<2x32xbf16>
    %cst_51 = arith.constant dense<0.000000e+00> : vector<2x128xf32>
    %81 = tpu.matmul %80, %37, %cst_51 {dimension_numbers = #tpu.dot_dimension_numbers<[1], [0], [0], [1], [0, 0, 1, 1], [], []>} : vector<2x32xbf16>, vector<32x128xbf16>, vector<2x128xf32> -> vector<2x128xf32>
    %82 = arith.addf %43, %81 : vector<2x128xf32>
    %83 = arith.negf %82 : vector<2x128xf32>
    %84 = math.exp %83 : vector<2x128xf32>
    %cst_52 = arith.constant 1.000000e+00 : f32
    %85 = vector.broadcast %cst_52 : f32 to vector<2x128xf32>
    %86 = arith.addf %85, %84 : vector<2x128xf32>
    %87 = arith.divf %85, %86 : vector<2x128xf32>
    %88 = math.tanh %82 : vector<2x128xf32>
    %89 = vector.extract_strided_slice %87 {offsets = [0, 0], sizes = [2, 32], strides = [1, 1]} : vector<2x128xf32> to vector<2x32xf32>
    %90 = vector.extract_strided_slice %87 {offsets = [0, 32], sizes = [2, 32], strides = [1, 1]} : vector<2x128xf32> to vector<2x32xf32>
    %91 = vector.extract_strided_slice %88 {offsets = [0, 64], sizes = [2, 32], strides = [1, 1]} : vector<2x128xf32> to vector<2x32xf32>
    %92 = vector.extract_strided_slice %87 {offsets = [0, 96], sizes = [2, 32], strides = [1, 1]} : vector<2x128xf32> to vector<2x32xf32>
    %93 = arith.mulf %90, %77 : vector<2x32xf32>
    %94 = arith.mulf %89, %91 : vector<2x32xf32>
    %95 = arith.addf %93, %94 : vector<2x32xf32>
    %96 = math.tanh %95 : vector<2x32xf32>
    %97 = arith.mulf %92, %96 : vector<2x32xf32>
    %98 = arith.truncf %97 : vector<2x32xf32> to vector<2x32xbf16>
    %cst_53 = arith.constant dense<0.000000e+00> : vector<2x128xf32>
    %99 = tpu.matmul %98, %37, %cst_53 {dimension_numbers = #tpu.dot_dimension_numbers<[1], [0], [0], [1], [0, 0, 1, 1], [], []>} : vector<2x32xbf16>, vector<32x128xbf16>, vector<2x128xf32> -> vector<2x128xf32>
    %100 = arith.addf %46, %99 : vector<2x128xf32>
    %101 = arith.negf %100 : vector<2x128xf32>
    %102 = math.exp %101 : vector<2x128xf32>
    %cst_54 = arith.constant 1.000000e+00 : f32
    %103 = vector.broadcast %cst_54 : f32 to vector<2x128xf32>
    %104 = arith.addf %103, %102 : vector<2x128xf32>
    %105 = arith.divf %103, %104 : vector<2x128xf32>
    %106 = math.tanh %100 : vector<2x128xf32>
    %107 = vector.extract_strided_slice %105 {offsets = [0, 0], sizes = [2, 32], strides = [1, 1]} : vector<2x128xf32> to vector<2x32xf32>
    %108 = vector.extract_strided_slice %105 {offsets = [0, 32], sizes = [2, 32], strides = [1, 1]} : vector<2x128xf32> to vector<2x32xf32>
    %109 = vector.extract_strided_slice %106 {offsets = [0, 64], sizes = [2, 32], strides = [1, 1]} : vector<2x128xf32> to vector<2x32xf32>
    %110 = vector.extract_strided_slice %105 {offsets = [0, 96], sizes = [2, 32], strides = [1, 1]} : vector<2x128xf32> to vector<2x32xf32>
    %111 = arith.mulf %108, %95 : vector<2x32xf32>
    %112 = arith.mulf %107, %109 : vector<2x32xf32>
    %113 = arith.addf %111, %112 : vector<2x32xf32>
    %114 = math.tanh %113 : vector<2x32xf32>
    %115 = arith.mulf %110, %114 : vector<2x32xf32>
    %116 = arith.truncf %115 : vector<2x32xf32> to vector<2x32xbf16>
    %cst_55 = arith.constant dense<0.000000e+00> : vector<2x128xf32>
    %117 = tpu.matmul %116, %37, %cst_55 {dimension_numbers = #tpu.dot_dimension_numbers<[1], [0], [0], [1], [0, 0, 1, 1], [], []>} : vector<2x32xbf16>, vector<32x128xbf16>, vector<2x128xf32> -> vector<2x128xf32>
    %118 = arith.addf %49, %117 : vector<2x128xf32>
    %119 = arith.negf %118 : vector<2x128xf32>
    %120 = math.exp %119 : vector<2x128xf32>
    %cst_56 = arith.constant 1.000000e+00 : f32
    %121 = vector.broadcast %cst_56 : f32 to vector<2x128xf32>
    %122 = arith.addf %121, %120 : vector<2x128xf32>
    %123 = arith.divf %121, %122 : vector<2x128xf32>
    %124 = math.tanh %118 : vector<2x128xf32>
    %125 = vector.extract_strided_slice %123 {offsets = [0, 0], sizes = [2, 32], strides = [1, 1]} : vector<2x128xf32> to vector<2x32xf32>
    %126 = vector.extract_strided_slice %123 {offsets = [0, 32], sizes = [2, 32], strides = [1, 1]} : vector<2x128xf32> to vector<2x32xf32>
    %127 = vector.extract_strided_slice %124 {offsets = [0, 64], sizes = [2, 32], strides = [1, 1]} : vector<2x128xf32> to vector<2x32xf32>
    %128 = vector.extract_strided_slice %123 {offsets = [0, 96], sizes = [2, 32], strides = [1, 1]} : vector<2x128xf32> to vector<2x32xf32>
    %129 = arith.mulf %126, %113 : vector<2x32xf32>
    %130 = arith.mulf %125, %127 : vector<2x32xf32>
    %131 = arith.addf %129, %130 : vector<2x32xf32>
    %132 = math.tanh %131 : vector<2x32xf32>
    %133 = arith.mulf %128, %132 : vector<2x32xf32>
    %134 = arith.truncf %133 : vector<2x32xf32> to vector<2x32xbf16>
    %cst_57 = arith.constant dense<0.000000e+00> : vector<2x128xf32>
    %135 = tpu.matmul %134, %37, %cst_57 {dimension_numbers = #tpu.dot_dimension_numbers<[1], [0], [0], [1], [0, 0, 1, 1], [], []>} : vector<2x32xbf16>, vector<32x128xbf16>, vector<2x128xf32> -> vector<2x128xf32>
    %136 = arith.addf %52, %135 : vector<2x128xf32>
    %137 = arith.negf %136 : vector<2x128xf32>
    %138 = math.exp %137 : vector<2x128xf32>
    %cst_58 = arith.constant 1.000000e+00 : f32
    %139 = vector.broadcast %cst_58 : f32 to vector<2x128xf32>
    %140 = arith.addf %139, %138 : vector<2x128xf32>
    %141 = arith.divf %139, %140 : vector<2x128xf32>
    %142 = math.tanh %136 : vector<2x128xf32>
    %143 = vector.extract_strided_slice %141 {offsets = [0, 0], sizes = [2, 32], strides = [1, 1]} : vector<2x128xf32> to vector<2x32xf32>
    %144 = vector.extract_strided_slice %141 {offsets = [0, 32], sizes = [2, 32], strides = [1, 1]} : vector<2x128xf32> to vector<2x32xf32>
    %145 = vector.extract_strided_slice %142 {offsets = [0, 64], sizes = [2, 32], strides = [1, 1]} : vector<2x128xf32> to vector<2x32xf32>
    %146 = vector.extract_strided_slice %141 {offsets = [0, 96], sizes = [2, 32], strides = [1, 1]} : vector<2x128xf32> to vector<2x32xf32>
    %147 = arith.mulf %144, %131 : vector<2x32xf32>
    %148 = arith.mulf %143, %145 : vector<2x32xf32>
    %149 = arith.addf %147, %148 : vector<2x32xf32>
    %150 = math.tanh %149 : vector<2x32xf32>
    %151 = arith.mulf %146, %150 : vector<2x32xf32>
    %152 = arith.truncf %151 : vector<2x32xf32> to vector<2x32xbf16>
    %cst_59 = arith.constant dense<0.000000e+00> : vector<2x128xf32>
    %153 = tpu.matmul %152, %37, %cst_59 {dimension_numbers = #tpu.dot_dimension_numbers<[1], [0], [0], [1], [0, 0, 1, 1], [], []>} : vector<2x32xbf16>, vector<32x128xbf16>, vector<2x128xf32> -> vector<2x128xf32>
    %154 = arith.addf %55, %153 : vector<2x128xf32>
    %155 = arith.negf %154 : vector<2x128xf32>
    %156 = math.exp %155 : vector<2x128xf32>
    %cst_60 = arith.constant 1.000000e+00 : f32
    %157 = vector.broadcast %cst_60 : f32 to vector<2x128xf32>
    %158 = arith.addf %157, %156 : vector<2x128xf32>
    %159 = arith.divf %157, %158 : vector<2x128xf32>
    %160 = math.tanh %154 : vector<2x128xf32>
    %161 = vector.extract_strided_slice %159 {offsets = [0, 0], sizes = [2, 32], strides = [1, 1]} : vector<2x128xf32> to vector<2x32xf32>
    %162 = vector.extract_strided_slice %159 {offsets = [0, 32], sizes = [2, 32], strides = [1, 1]} : vector<2x128xf32> to vector<2x32xf32>
    %163 = vector.extract_strided_slice %160 {offsets = [0, 64], sizes = [2, 32], strides = [1, 1]} : vector<2x128xf32> to vector<2x32xf32>
    %164 = vector.extract_strided_slice %159 {offsets = [0, 96], sizes = [2, 32], strides = [1, 1]} : vector<2x128xf32> to vector<2x32xf32>
    %165 = arith.mulf %162, %149 : vector<2x32xf32>
    %166 = arith.mulf %161, %163 : vector<2x32xf32>
    %167 = arith.addf %165, %166 : vector<2x32xf32>
    %168 = math.tanh %167 : vector<2x32xf32>
    %169 = arith.mulf %164, %168 : vector<2x32xf32>
    %170 = arith.truncf %169 : vector<2x32xf32> to vector<2x32xbf16>
    %cst_61 = arith.constant dense<0.000000e+00> : vector<2x128xf32>
    %171 = tpu.matmul %170, %37, %cst_61 {dimension_numbers = #tpu.dot_dimension_numbers<[1], [0], [0], [1], [0, 0, 1, 1], [], []>} : vector<2x32xbf16>, vector<32x128xbf16>, vector<2x128xf32> -> vector<2x128xf32>
    %172 = arith.addf %58, %171 : vector<2x128xf32>
    %173 = arith.negf %172 : vector<2x128xf32>
    %174 = math.exp %173 : vector<2x128xf32>
    %cst_62 = arith.constant 1.000000e+00 : f32
    %175 = vector.broadcast %cst_62 : f32 to vector<2x128xf32>
    %176 = arith.addf %175, %174 : vector<2x128xf32>
    %177 = arith.divf %175, %176 : vector<2x128xf32>
    %178 = math.tanh %172 : vector<2x128xf32>
    %179 = vector.extract_strided_slice %177 {offsets = [0, 0], sizes = [2, 32], strides = [1, 1]} : vector<2x128xf32> to vector<2x32xf32>
    %180 = vector.extract_strided_slice %177 {offsets = [0, 32], sizes = [2, 32], strides = [1, 1]} : vector<2x128xf32> to vector<2x32xf32>
    %181 = vector.extract_strided_slice %178 {offsets = [0, 64], sizes = [2, 32], strides = [1, 1]} : vector<2x128xf32> to vector<2x32xf32>
    %182 = vector.extract_strided_slice %177 {offsets = [0, 96], sizes = [2, 32], strides = [1, 1]} : vector<2x128xf32> to vector<2x32xf32>
    %183 = arith.mulf %180, %167 : vector<2x32xf32>
    %184 = arith.mulf %179, %181 : vector<2x32xf32>
    %185 = arith.addf %183, %184 : vector<2x32xf32>
    %186 = math.tanh %185 : vector<2x32xf32>
    %187 = arith.mulf %182, %186 : vector<2x32xf32>
    %188 = arith.truncf %187 : vector<2x32xf32> to vector<2x32xbf16>
    %cst_63 = arith.constant dense<0.000000e+00> : vector<2x128xf32>
    %189 = tpu.matmul %188, %37, %cst_63 {dimension_numbers = #tpu.dot_dimension_numbers<[1], [0], [0], [1], [0, 0, 1, 1], [], []>} : vector<2x32xbf16>, vector<32x128xbf16>, vector<2x128xf32> -> vector<2x128xf32>
    %190 = arith.addf %61, %189 : vector<2x128xf32>
    %191 = arith.negf %190 : vector<2x128xf32>
    %192 = math.exp %191 : vector<2x128xf32>
    %cst_64 = arith.constant 1.000000e+00 : f32
    %193 = vector.broadcast %cst_64 : f32 to vector<2x128xf32>
    %194 = arith.addf %193, %192 : vector<2x128xf32>
    %195 = arith.divf %193, %194 : vector<2x128xf32>
    %196 = math.tanh %190 : vector<2x128xf32>
    %197 = vector.extract_strided_slice %195 {offsets = [0, 0], sizes = [2, 32], strides = [1, 1]} : vector<2x128xf32> to vector<2x32xf32>
    %198 = vector.extract_strided_slice %195 {offsets = [0, 32], sizes = [2, 32], strides = [1, 1]} : vector<2x128xf32> to vector<2x32xf32>
    %199 = vector.extract_strided_slice %196 {offsets = [0, 64], sizes = [2, 32], strides = [1, 1]} : vector<2x128xf32> to vector<2x32xf32>
    %200 = vector.extract_strided_slice %195 {offsets = [0, 96], sizes = [2, 32], strides = [1, 1]} : vector<2x128xf32> to vector<2x32xf32>
    %201 = arith.mulf %198, %185 : vector<2x32xf32>
    %202 = arith.mulf %197, %199 : vector<2x32xf32>
    %203 = arith.addf %201, %202 : vector<2x32xf32>
    %204 = math.tanh %203 : vector<2x32xf32>
    %205 = arith.mulf %200, %204 : vector<2x32xf32>
    %206 = arith.truncf %205 : vector<2x32xf32> to vector<2x32xbf16>
    %c0_65 = arith.constant 0 : index
    %c0_66 = arith.constant 0 : index
    %207 = vector.load %arg10[%c0_65, %c0_66] : memref<32x64xbf16, #tpu.memory_space<vmem>>, vector<32x64xbf16>
    %cst_67 = arith.constant dense<0.000000e+00> : vector<2x64xf32>
    %208 = tpu.matmul %206, %207, %cst_67 {dimension_numbers = #tpu.dot_dimension_numbers<[1], [0], [0], [1], [0, 0, 1, 1], [], []>} : vector<2x32xbf16>, vector<32x64xbf16>, vector<2x64xf32> -> vector<2x64xf32>
    %c0_68 = arith.constant 0 : index
    %c0_69 = arith.constant 0 : index
    %209 = vector.load %arg11[%c0_68, %c0_69] : memref<1x64xf32, #tpu.memory_space<vmem>>, vector<1x64xf32>
    %210 = vector.broadcast %209 : vector<1x64xf32> to vector<2x64xf32>
    %211 = arith.addf %208, %210 : vector<2x64xf32>
    %212 = vector.extract_strided_slice %211 {offsets = [0, 0], sizes = [2, 32], strides = [1, 1]} : vector<2x64xf32> to vector<2x32xf32>
    %213 = vector.extract_strided_slice %211 {offsets = [0, 32], sizes = [2, 32], strides = [1, 1]} : vector<2x64xf32> to vector<2x32xf32>
    %c0_70 = arith.constant 0 : index
    %c0_71 = arith.constant 0 : index
    %214 = vector.load %arg9[%c0_70, %c0_71] : memref<2x1xf32, #tpu.memory_space<vmem>>, vector<2x1xf32>
    %cst_72 = arith.constant 5.000000e-01 : f32
    %215 = vector.broadcast %cst_72 : f32 to vector<2x32xf32>
    %216 = arith.mulf %215, %213 : vector<2x32xf32>
    %217 = math.exp %216 : vector<2x32xf32>
    %218 = vector.broadcast %214 : vector<2x1xf32> to vector<2x32xf32>
    %219 = arith.mulf %218, %217 : vector<2x32xf32>
    %220 = arith.addf %219, %212 : vector<2x32xf32>
    %221 = arith.truncf %220 : vector<2x32xf32> to vector<2x32xbf16>
    %c0_73 = arith.constant 0 : index
    %c0_74 = arith.constant 0 : index
    %222 = vector.load %arg12[%c0_73, %c0_74] : memref<32x32xbf16, #tpu.memory_space<vmem>>, vector<32x32xbf16>
    %cst_75 = arith.constant dense<0.000000e+00> : vector<2x32xf32>
    %223 = tpu.matmul %221, %222, %cst_75 {dimension_numbers = #tpu.dot_dimension_numbers<[1], [0], [0], [1], [0, 0, 1, 1], [], []>} : vector<2x32xbf16>, vector<32x32xbf16>, vector<2x32xf32> -> vector<2x32xf32>
    %c0_76 = arith.constant 0 : index
    %c0_77 = arith.constant 0 : index
    %224 = vector.load %arg13[%c0_76, %c0_77] : memref<1x32xf32, #tpu.memory_space<vmem>>, vector<1x32xf32>
    %225 = vector.broadcast %224 : vector<1x32xf32> to vector<2x32xf32>
    %226 = arith.addf %223, %225 : vector<2x32xf32>
    %227 = tpu.concatenate %211, %205, %203 in 1 : vector<2x64xf32>, vector<2x32xf32>, vector<2x32xf32> -> vector<2x128xf32>
    %c0_78 = arith.constant 0 : index
    %c0_79 = arith.constant 0 : index
    %228 = vector.load %arg15[%c0_78, %c0_79] : memref<2x128xf32, #tpu.memory_space<vmem>>, vector<2x128xf32>
    tpu.vector_store %arg15[%c0_78, %c0_79], %227 {strides = array<i32>} : memref<2x128xf32, #tpu.memory_space<vmem>>, vector<2x128xf32>,
    %c0_80 = arith.constant 0 : index
    %c0_81 = arith.constant 0 : index
    %229 = vector.load %arg6[%c0_80, %c0_81] : memref<32x128xbf16, #tpu.memory_space<vmem>>, vector<32x128xbf16>
    %c0_82 = arith.constant 0 : index
    %c0_83 = arith.constant 0 : index
    %230 = vector.load %arg17[%c0_82, %c0_83] : memref<16x128xf32, #tpu.memory_space<vmem>>, vector<2x128xf32>
    %c14_84 = arith.constant 14 : index
    %c0_85 = arith.constant 0 : index
    %231 = vector.load %arg17[%c14_84, %c0_85] : memref<16x128xf32, #tpu.memory_space<vmem>>, vector<2x128xf32>
    %232 = arith.select %18, %230, %231 : vector<2x128xi1>, vector<2x128xf32>
    %c2_86 = arith.constant 2 : index
    %c0_87 = arith.constant 0 : index
    %233 = vector.load %arg17[%c2_86, %c0_87] : memref<16x128xf32, #tpu.memory_space<vmem>>, vector<2x128xf32>
    %c12_88 = arith.constant 12 : index
    %c0_89 = arith.constant 0 : index
    %234 = vector.load %arg17[%c12_88, %c0_89] : memref<16x128xf32, #tpu.memory_space<vmem>>, vector<2x128xf32>
    %235 = arith.select %18, %233, %234 : vector<2x128xi1>, vector<2x128xf32>
    %c4_90 = arith.constant 4 : index
    %c0_91 = arith.constant 0 : index
    %236 = vector.load %arg17[%c4_90, %c0_91] : memref<16x128xf32, #tpu.memory_space<vmem>>, vector<2x128xf32>
    %c10_92 = arith.constant 10 : index
    %c0_93 = arith.constant 0 : index
    %237 = vector.load %arg17[%c10_92, %c0_93] : memref<16x128xf32, #tpu.memory_space<vmem>>, vector<2x128xf32>
    %238 = arith.select %18, %236, %237 : vector<2x128xi1>, vector<2x128xf32>
    %c6_94 = arith.constant 6 : index
    %c0_95 = arith.constant 0 : index
    %239 = vector.load %arg17[%c6_94, %c0_95] : memref<16x128xf32, #tpu.memory_space<vmem>>, vector<2x128xf32>
    %c8_96 = arith.constant 8 : index
    %c0_97 = arith.constant 0 : index
    %240 = vector.load %arg17[%c8_96, %c0_97] : memref<16x128xf32, #tpu.memory_space<vmem>>, vector<2x128xf32>
    %241 = arith.select %18, %239, %240 : vector<2x128xi1>, vector<2x128xf32>
    %c8_98 = arith.constant 8 : index
    %c0_99 = arith.constant 0 : index
    %242 = vector.load %arg17[%c8_98, %c0_99] : memref<16x128xf32, #tpu.memory_space<vmem>>, vector<2x128xf32>
    %c6_100 = arith.constant 6 : index
    %c0_101 = arith.constant 0 : index
    %243 = vector.load %arg17[%c6_100, %c0_101] : memref<16x128xf32, #tpu.memory_space<vmem>>, vector<2x128xf32>
    %244 = arith.select %18, %242, %243 : vector<2x128xi1>, vector<2x128xf32>
    %c10_102 = arith.constant 10 : index
    %c0_103 = arith.constant 0 : index
    %245 = vector.load %arg17[%c10_102, %c0_103] : memref<16x128xf32, #tpu.memory_space<vmem>>, vector<2x128xf32>
    %c4_104 = arith.constant 4 : index
    %c0_105 = arith.constant 0 : index
    %246 = vector.load %arg17[%c4_104, %c0_105] : memref<16x128xf32, #tpu.memory_space<vmem>>, vector<2x128xf32>
    %247 = arith.select %18, %245, %246 : vector<2x128xi1>, vector<2x128xf32>
    %c12_106 = arith.constant 12 : index
    %c0_107 = arith.constant 0 : index
    %248 = vector.load %arg17[%c12_106, %c0_107] : memref<16x128xf32, #tpu.memory_space<vmem>>, vector<2x128xf32>
    %c2_108 = arith.constant 2 : index
    %c0_109 = arith.constant 0 : index
    %249 = vector.load %arg17[%c2_108, %c0_109] : memref<16x128xf32, #tpu.memory_space<vmem>>, vector<2x128xf32>
    %250 = arith.select %18, %248, %249 : vector<2x128xi1>, vector<2x128xf32>
    %c14_110 = arith.constant 14 : index
    %c0_111 = arith.constant 0 : index
    %251 = vector.load %arg17[%c14_110, %c0_111] : memref<16x128xf32, #tpu.memory_space<vmem>>, vector<2x128xf32>
    %c0_112 = arith.constant 0 : index
    %c0_113 = arith.constant 0 : index
    %252 = vector.load %arg17[%c0_112, %c0_113] : memref<16x128xf32, #tpu.memory_space<vmem>>, vector<2x128xf32>
    %253 = arith.select %18, %251, %252 : vector<2x128xi1>, vector<2x128xf32>
    %254 = arith.truncf %226 : vector<2x32xf32> to vector<2x32xbf16>
    %cst_114 = arith.constant dense<0.000000e+00> : vector<2x128xf32>
    %255 = tpu.matmul %254, %229, %cst_114 {dimension_numbers = #tpu.dot_dimension_numbers<[1], [0], [0], [1], [0, 0, 1, 1], [], []>} : vector<2x32xbf16>, vector<32x128xbf16>, vector<2x128xf32> -> vector<2x128xf32>
    %256 = arith.addf %232, %255 : vector<2x128xf32>
    %257 = arith.negf %256 : vector<2x128xf32>
    %258 = math.exp %257 : vector<2x128xf32>
    %cst_115 = arith.constant 1.000000e+00 : f32
    %259 = vector.broadcast %cst_115 : f32 to vector<2x128xf32>
    %260 = arith.addf %259, %258 : vector<2x128xf32>
    %261 = arith.divf %259, %260 : vector<2x128xf32>
    %262 = math.tanh %256 : vector<2x128xf32>
    %263 = vector.extract_strided_slice %261 {offsets = [0, 0], sizes = [2, 32], strides = [1, 1]} : vector<2x128xf32> to vector<2x32xf32>
    %264 = vector.extract_strided_slice %261 {offsets = [0, 32], sizes = [2, 32], strides = [1, 1]} : vector<2x128xf32> to vector<2x32xf32>
    %265 = vector.extract_strided_slice %262 {offsets = [0, 64], sizes = [2, 32], strides = [1, 1]} : vector<2x128xf32> to vector<2x32xf32>
    %266 = vector.extract_strided_slice %261 {offsets = [0, 96], sizes = [2, 32], strides = [1, 1]} : vector<2x128xf32> to vector<2x32xf32>
    %267 = arith.mulf %264, %226 : vector<2x32xf32>
    %268 = arith.mulf %263, %265 : vector<2x32xf32>
    %269 = arith.addf %267, %268 : vector<2x32xf32>
    %270 = math.tanh %269 : vector<2x32xf32>
    %271 = arith.mulf %266, %270 : vector<2x32xf32>
    %272 = arith.truncf %271 : vector<2x32xf32> to vector<2x32xbf16>
    %cst_116 = arith.constant dense<0.000000e+00> : vector<2x128xf32>
    %273 = tpu.matmul %272, %229, %cst_116 {dimension_numbers = #tpu.dot_dimension_numbers<[1], [0], [0], [1], [0, 0, 1, 1], [], []>} : vector<2x32xbf16>, vector<32x128xbf16>, vector<2x128xf32> -> vector<2x128xf32>
    %274 = arith.addf %235, %273 : vector<2x128xf32>
    %275 = arith.negf %274 : vector<2x128xf32>
    %276 = math.exp %275 : vector<2x128xf32>
    %cst_117 = arith.constant 1.000000e+00 : f32
    %277 = vector.broadcast %cst_117 : f32 to vector<2x128xf32>
    %278 = arith.addf %277, %276 : vector<2x128xf32>
    %279 = arith.divf %277, %278 : vector<2x128xf32>
    %280 = math.tanh %274 : vector<2x128xf32>
    %281 = vector.extract_strided_slice %279 {offsets = [0, 0], sizes = [2, 32], strides = [1, 1]} : vector<2x128xf32> to vector<2x32xf32>
    %282 = vector.extract_strided_slice %279 {offsets = [0, 32], sizes = [2, 32], strides = [1, 1]} : vector<2x128xf32> to vector<2x32xf32>
    %283 = vector.extract_strided_slice %280 {offsets = [0, 64], sizes = [2, 32], strides = [1, 1]} : vector<2x128xf32> to vector<2x32xf32>
    %284 = vector.extract_strided_slice %279 {offsets = [0, 96], sizes = [2, 32], strides = [1, 1]} : vector<2x128xf32> to vector<2x32xf32>
    %285 = arith.mulf %282, %269 : vector<2x32xf32>
    %286 = arith.mulf %281, %283 : vector<2x32xf32>
    %287 = arith.addf %285, %286 : vector<2x32xf32>
    %288 = math.tanh %287 : vector<2x32xf32>
    %289 = arith.mulf %284, %288 : vector<2x32xf32>
    %290 = arith.truncf %289 : vector<2x32xf32> to vector<2x32xbf16>
    %cst_118 = arith.constant dense<0.000000e+00> : vector<2x128xf32>
    %291 = tpu.matmul %290, %229, %cst_118 {dimension_numbers = #tpu.dot_dimension_numbers<[1], [0], [0], [1], [0, 0, 1, 1], [], []>} : vector<2x32xbf16>, vector<32x128xbf16>, vector<2x128xf32> -> vector<2x128xf32>
    %292 = arith.addf %238, %291 : vector<2x128xf32>
    %293 = arith.negf %292 : vector<2x128xf32>
    %294 = math.exp %293 : vector<2x128xf32>
    %cst_119 = arith.constant 1.000000e+00 : f32
    %295 = vector.broadcast %cst_119 : f32 to vector<2x128xf32>
    %296 = arith.addf %295, %294 : vector<2x128xf32>
    %297 = arith.divf %295, %296 : vector<2x128xf32>
    %298 = math.tanh %292 : vector<2x128xf32>
    %299 = vector.extract_strided_slice %297 {offsets = [0, 0], sizes = [2, 32], strides = [1, 1]} : vector<2x128xf32> to vector<2x32xf32>
    %300 = vector.extract_strided_slice %297 {offsets = [0, 32], sizes = [2, 32], strides = [1, 1]} : vector<2x128xf32> to vector<2x32xf32>
    %301 = vector.extract_strided_slice %298 {offsets = [0, 64], sizes = [2, 32], strides = [1, 1]} : vector<2x128xf32> to vector<2x32xf32>
    %302 = vector.extract_strided_slice %297 {offsets = [0, 96], sizes = [2, 32], strides = [1, 1]} : vector<2x128xf32> to vector<2x32xf32>
    %303 = arith.mulf %300, %287 : vector<2x32xf32>
    %304 = arith.mulf %299, %301 : vector<2x32xf32>
    %305 = arith.addf %303, %304 : vector<2x32xf32>
    %306 = math.tanh %305 : vector<2x32xf32>
    %307 = arith.mulf %302, %306 : vector<2x32xf32>
    %308 = arith.truncf %307 : vector<2x32xf32> to vector<2x32xbf16>
    %cst_120 = arith.constant dense<0.000000e+00> : vector<2x128xf32>
    %309 = tpu.matmul %308, %229, %cst_120 {dimension_numbers = #tpu.dot_dimension_numbers<[1], [0], [0], [1], [0, 0, 1, 1], [], []>} : vector<2x32xbf16>, vector<32x128xbf16>, vector<2x128xf32> -> vector<2x128xf32>
    %310 = arith.addf %241, %309 : vector<2x128xf32>
    %311 = arith.negf %310 : vector<2x128xf32>
    %312 = math.exp %311 : vector<2x128xf32>
    %cst_121 = arith.constant 1.000000e+00 : f32
    %313 = vector.broadcast %cst_121 : f32 to vector<2x128xf32>
    %314 = arith.addf %313, %312 : vector<2x128xf32>
    %315 = arith.divf %313, %314 : vector<2x128xf32>
    %316 = math.tanh %310 : vector<2x128xf32>
    %317 = vector.extract_strided_slice %315 {offsets = [0, 0], sizes = [2, 32], strides = [1, 1]} : vector<2x128xf32> to vector<2x32xf32>
    %318 = vector.extract_strided_slice %315 {offsets = [0, 32], sizes = [2, 32], strides = [1, 1]} : vector<2x128xf32> to vector<2x32xf32>
    %319 = vector.extract_strided_slice %316 {offsets = [0, 64], sizes = [2, 32], strides = [1, 1]} : vector<2x128xf32> to vector<2x32xf32>
    %320 = vector.extract_strided_slice %315 {offsets = [0, 96], sizes = [2, 32], strides = [1, 1]} : vector<2x128xf32> to vector<2x32xf32>
    %321 = arith.mulf %318, %305 : vector<2x32xf32>
    %322 = arith.mulf %317, %319 : vector<2x32xf32>
    %323 = arith.addf %321, %322 : vector<2x32xf32>
    %324 = math.tanh %323 : vector<2x32xf32>
    %325 = arith.mulf %320, %324 : vector<2x32xf32>
    %326 = arith.truncf %325 : vector<2x32xf32> to vector<2x32xbf16>
    %cst_122 = arith.constant dense<0.000000e+00> : vector<2x128xf32>
    %327 = tpu.matmul %326, %229, %cst_122 {dimension_numbers = #tpu.dot_dimension_numbers<[1], [0], [0], [1], [0, 0, 1, 1], [], []>} : vector<2x32xbf16>, vector<32x128xbf16>, vector<2x128xf32> -> vector<2x128xf32>
    %328 = arith.addf %244, %327 : vector<2x128xf32>
    %329 = arith.negf %328 : vector<2x128xf32>
    %330 = math.exp %329 : vector<2x128xf32>
    %cst_123 = arith.constant 1.000000e+00 : f32
    %331 = vector.broadcast %cst_123 : f32 to vector<2x128xf32>
    %332 = arith.addf %331, %330 : vector<2x128xf32>
    %333 = arith.divf %331, %332 : vector<2x128xf32>
    %334 = math.tanh %328 : vector<2x128xf32>
    %335 = vector.extract_strided_slice %333 {offsets = [0, 0], sizes = [2, 32], strides = [1, 1]} : vector<2x128xf32> to vector<2x32xf32>
    %336 = vector.extract_strided_slice %333 {offsets = [0, 32], sizes = [2, 32], strides = [1, 1]} : vector<2x128xf32> to vector<2x32xf32>
    %337 = vector.extract_strided_slice %334 {offsets = [0, 64], sizes = [2, 32], strides = [1, 1]} : vector<2x128xf32> to vector<2x32xf32>
    %338 = vector.extract_strided_slice %333 {offsets = [0, 96], sizes = [2, 32], strides = [1, 1]} : vector<2x128xf32> to vector<2x32xf32>
    %339 = arith.mulf %336, %323 : vector<2x32xf32>
    %340 = arith.mulf %335, %337 : vector<2x32xf32>
    %341 = arith.addf %339, %340 : vector<2x32xf32>
    %342 = math.tanh %341 : vector<2x32xf32>
    %343 = arith.mulf %338, %342 : vector<2x32xf32>
    %344 = arith.truncf %343 : vector<2x32xf32> to vector<2x32xbf16>
    %cst_124 = arith.constant dense<0.000000e+00> : vector<2x128xf32>
    %345 = tpu.matmul %344, %229, %cst_124 {dimension_numbers = #tpu.dot_dimension_numbers<[1], [0], [0], [1], [0, 0, 1, 1], [], []>} : vector<2x32xbf16>, vector<32x128xbf16>, vector<2x128xf32> -> vector<2x128xf32>
    %346 = arith.addf %247, %345 : vector<2x128xf32>
    %347 = arith.negf %346 : vector<2x128xf32>
    %348 = math.exp %347 : vector<2x128xf32>
    %cst_125 = arith.constant 1.000000e+00 : f32
    %349 = vector.broadcast %cst_125 : f32 to vector<2x128xf32>
    %350 = arith.addf %349, %348 : vector<2x128xf32>
    %351 = arith.divf %349, %350 : vector<2x128xf32>
    %352 = math.tanh %346 : vector<2x128xf32>
    %353 = vector.extract_strided_slice %351 {offsets = [0, 0], sizes = [2, 32], strides = [1, 1]} : vector<2x128xf32> to vector<2x32xf32>
    %354 = vector.extract_strided_slice %351 {offsets = [0, 32], sizes = [2, 32], strides = [1, 1]} : vector<2x128xf32> to vector<2x32xf32>
    %355 = vector.extract_strided_slice %352 {offsets = [0, 64], sizes = [2, 32], strides = [1, 1]} : vector<2x128xf32> to vector<2x32xf32>
    %356 = vector.extract_strided_slice %351 {offsets = [0, 96], sizes = [2, 32], strides = [1, 1]} : vector<2x128xf32> to vector<2x32xf32>
    %357 = arith.mulf %354, %341 : vector<2x32xf32>
    %358 = arith.mulf %353, %355 : vector<2x32xf32>
    %359 = arith.addf %357, %358 : vector<2x32xf32>
    %360 = math.tanh %359 : vector<2x32xf32>
    %361 = arith.mulf %356, %360 : vector<2x32xf32>
    %362 = arith.truncf %361 : vector<2x32xf32> to vector<2x32xbf16>
    %cst_126 = arith.constant dense<0.000000e+00> : vector<2x128xf32>
    %363 = tpu.matmul %362, %229, %cst_126 {dimension_numbers = #tpu.dot_dimension_numbers<[1], [0], [0], [1], [0, 0, 1, 1], [], []>} : vector<2x32xbf16>, vector<32x128xbf16>, vector<2x128xf32> -> vector<2x128xf32>
    %364 = arith.addf %250, %363 : vector<2x128xf32>
    %365 = arith.negf %364 : vector<2x128xf32>
    %366 = math.exp %365 : vector<2x128xf32>
    %cst_127 = arith.constant 1.000000e+00 : f32
    %367 = vector.broadcast %cst_127 : f32 to vector<2x128xf32>
    %368 = arith.addf %367, %366 : vector<2x128xf32>
    %369 = arith.divf %367, %368 : vector<2x128xf32>
    %370 = math.tanh %364 : vector<2x128xf32>
    %371 = vector.extract_strided_slice %369 {offsets = [0, 0], sizes = [2, 32], strides = [1, 1]} : vector<2x128xf32> to vector<2x32xf32>
    %372 = vector.extract_strided_slice %369 {offsets = [0, 32], sizes = [2, 32], strides = [1, 1]} : vector<2x128xf32> to vector<2x32xf32>
    %373 = vector.extract_strided_slice %370 {offsets = [0, 64], sizes = [2, 32], strides = [1, 1]} : vector<2x128xf32> to vector<2x32xf32>
    %374 = vector.extract_strided_slice %369 {offsets = [0, 96], sizes = [2, 32], strides = [1, 1]} : vector<2x128xf32> to vector<2x32xf32>
    %375 = arith.mulf %372, %359 : vector<2x32xf32>
    %376 = arith.mulf %371, %373 : vector<2x32xf32>
    %377 = arith.addf %375, %376 : vector<2x32xf32>
    %378 = math.tanh %377 : vector<2x32xf32>
    %379 = arith.mulf %374, %378 : vector<2x32xf32>
    %380 = arith.truncf %379 : vector<2x32xf32> to vector<2x32xbf16>
    %cst_128 = arith.constant dense<0.000000e+00> : vector<2x128xf32>
    %381 = tpu.matmul %380, %229, %cst_128 {dimension_numbers = #tpu.dot_dimension_numbers<[1], [0], [0], [1], [0, 0, 1, 1], [], []>} : vector<2x32xbf16>, vector<32x128xbf16>, vector<2x128xf32> -> vector<2x128xf32>
    %382 = arith.addf %253, %381 : vector<2x128xf32>
    %383 = arith.negf %382 : vector<2x128xf32>
    %384 = math.exp %383 : vector<2x128xf32>
    %cst_129 = arith.constant 1.000000e+00 : f32
    %385 = vector.broadcast %cst_129 : f32 to vector<2x128xf32>
    %386 = arith.addf %385, %384 : vector<2x128xf32>
    %387 = arith.divf %385, %386 : vector<2x128xf32>
    %388 = math.tanh %382 : vector<2x128xf32>
    %389 = vector.extract_strided_slice %387 {offsets = [0, 0], sizes = [2, 32], strides = [1, 1]} : vector<2x128xf32> to vector<2x32xf32>
    %390 = vector.extract_strided_slice %387 {offsets = [0, 32], sizes = [2, 32], strides = [1, 1]} : vector<2x128xf32> to vector<2x32xf32>
    %391 = vector.extract_strided_slice %388 {offsets = [0, 64], sizes = [2, 32], strides = [1, 1]} : vector<2x128xf32> to vector<2x32xf32>
    %392 = vector.extract_strided_slice %387 {offsets = [0, 96], sizes = [2, 32], strides = [1, 1]} : vector<2x128xf32> to vector<2x32xf32>
    %393 = arith.mulf %390, %377 : vector<2x32xf32>
    %394 = arith.mulf %389, %391 : vector<2x32xf32>
    %395 = arith.addf %393, %394 : vector<2x32xf32>
    %396 = math.tanh %395 : vector<2x32xf32>
    %397 = arith.mulf %392, %396 : vector<2x32xf32>
    %398 = arith.select %21, %271, %397 : vector<2x32xi1>, vector<2x32xf32>
    %399 = arith.select %21, %289, %379 : vector<2x32xi1>, vector<2x32xf32>
    %400 = arith.select %21, %307, %361 : vector<2x32xi1>, vector<2x32xf32>
    %401 = arith.select %21, %325, %343 : vector<2x32xi1>, vector<2x32xf32>
    %402 = arith.select %21, %343, %325 : vector<2x32xi1>, vector<2x32xf32>
    %403 = arith.select %21, %361, %307 : vector<2x32xi1>, vector<2x32xf32>
    %404 = arith.select %21, %379, %289 : vector<2x32xi1>, vector<2x32xf32>
    %405 = arith.select %21, %397, %271 : vector<2x32xi1>, vector<2x32xf32>
    %406 = tpu.concatenate %398, %399, %400, %401, %402, %403, %404, %405 in 1 : vector<2x32xf32>, vector<2x32xf32>, vector<2x32xf32>, vector<2x32xf32>, vector<2x32xf32>, vector<2x32xf32>, vector<2x32xf32>, vector<2x32xf32> -> vector<2x256xf32>
    %c0_130 = arith.constant 0 : index
    %c0_131 = arith.constant 0 : index
    %407 = vector.load %arg14[%c0_130, %c0_131] : memref<2x256xf32, #tpu.memory_space<vmem>>, vector<2x256xf32>
    tpu.vector_store %arg14[%c0_130, %c0_131], %406 {strides = array<i32>} : memref<2x256xf32, #tpu.memory_space<vmem>>, vector<2x256xf32>,
    return
  }
}

</mosaic_0001>

<bundles_post_ra>
// kernel: bilstm_vae_forward.1
= control target key start
LH: loop header
LB: loop body
LE: loop exit
PB: predicated region body
PF: predicated region fallthrough
CT: control target
= control target key end

     0   :  { %21 = vsyncpa [#allocation5], 0  ;;  %s2774_s0 = inlined_call_operand.vmem [shape: bf16[16,32], index: 0, kind: input, shape index: {}]   ;;  %s2775_s1 = inlined_call_operand.vmem [shape: bf16[32,128], index: 1, kind: input, shape index: {}]   ;;  %s2776_s2 = inlined_call_operand.vmem [shape: bf16[32,128], index: 2, kind: input, shape index: {}]   ;;  %s2777_s3 = inlined_call_operand.vmem [shape: f32[1,128], index: 3, kind: input, shape index: {}]   ;;  %s2778_s4 = inlined_call_operand.vmem [shape: f32[1,128], index: 4, kind: input, shape index: {}]   ;;  %s2779_s5 = inlined_call_operand.vmem [shape: bf16[32,128], index: 5, kind: input, shape index: {}]   ;;  %s2780_s6 = inlined_call_operand.vmem [shape: bf16[32,128], index: 6, kind: input, shape index: {}]   ;;  %s2781_s7 = inlined_call_operand.vmem [shape: f32[2,32], index: 7, kind: input, shape index: {}]   ;;  %s2782_s8 = inlined_call_operand.vmem [shape: f32[2,32], index: 8, kind: input, shape index: {}]   ;;  %s2783_s9 = inlined_call_operand.vmem [shape: f32[2,1], index: 9, kind: input, shape index: {}]   ;;  %s2784_s10 = inlined_call_operand.hbm [shape: bf16[32,64], index: 10, kind: input, shape index: {}]   ;;  %s2785_s11 = inlined_call_operand.vmem [shape: f32[1,64], index: 11, kind: input, shape index: {}]   ;;  %s2786_s12 = inlined_call_operand.hbm [shape: bf16[32,32], index: 12, kind: input, shape index: {}]   ;;  %s2787_s13 = inlined_call_operand.vmem [shape: f32[1,32], index: 13, kind: input, shape index: {}]   ;;  %s2788_s14 = inlined_call_operand.vmem [shape: f32[2,256], index: 14, kind: output, shape index: {0}]   ;;  %s2789_s15 = inlined_call_operand.vmem [shape: f32[2,128], index: 15, kind: output, shape index: {1}]  }
   0x1   :  { %22 = vsyncpa [#allocation7], 0  ;;  %s2189_s18 = smov [#allocation4]  }
   0x2   :  { %s48_s19 = sshll.u32 %s2189_s18, 4  ;;  %s49_s19 = int_to_ptr.vmem [resolvable:$true] %s48_s19 }
   0x3   :  { %s2153_s20 = scalar_lea.vmem %s49_s19, 256  ;;  %p2158_p1 = scmp.lt.s32.totalorder %s49_s19, %s49_s19 }
   0x4   :  { %p2154_p0 = scmp.ne.s32.totalorder %s49_s19, %s2153_s20  ;;  %p2159_p2 = scmp.lt.s32.totalorder %s2153_s20, %s2153_s20 }
   0x6   :  { %p2160_p3 = por %p2159_p2, %p2158_p1 }
   0x8   :  { %p2161_p4 = pnand %p2160_p3, %p2154_p0 }
   0xa   :  { %2164 = shalt.err (!%p2161_p4)
}
   0xb   :  { %s2190_s21 = smov 64   ;;  %s2191_s22 = smov 4  }
   0xc   :  { %54 = dma.hbm_to_vmem [thread:$0]  %s2784_s10, 256, %s49_s19, [#allocation5], %s2190_s21, %s2190_s21, %s2191_s22  }
   0xd   :  { %s2192_s25 = smov [#allocation6]  }
   0xe   :  { %s62_s26 = sshll.u32 %s2192_s25, 4  ;;  %s63_s26 = int_to_ptr.vmem [resolvable:$true] %s62_s26 }
   0xf   :  { %s2173_s27 = scalar_lea.vmem %s63_s26, 256  ;;  %p2178_p6 = scmp.lt.s32.totalorder %s63_s26, %s63_s26 }
  0x10   :  { %p2174_p5 = scmp.ne.s32.totalorder %s63_s26, %s2173_s27  ;;  %p2179_p7 = scmp.lt.s32.totalorder %s2173_s27, %s2173_s27 }
  0x12   :  { %p2180_p8 = por %p2179_p7, %p2178_p6 }
  0x14   :  { %p2181_p9 = pnand %p2180_p8, %p2174_p5 }
  0x16   :  { %2184 = shalt.err (!%p2181_p9)
}
  0x17   :  { %68 = dma.hbm_to_vmem [thread:$0]  %s2786_s12, 256, %s63_s26, [#allocation7], %s2190_s21, %s2190_s21, %s2191_s22  }
  0x18   :  { %2185 = dma.done.wait [#allocation5], 256  }
  0x19   :  { %2186 = vsyncadd [#allocation5], 4294967040 }
  0x1a   :  { %2187 = dma.done.wait [#allocation7], 256  }
  0x1b   :  { %2188 = vsyncadd [#allocation7], 4294967040  ;;  %v2193_v0 = vmov 0.0   ;;  %vm2194_vm0 = vmmov 0   ;;  %v2002_v1 = vld [vmem:[%s2775_s1 + $0x8] sm:$0xff]   ;;  %v2003_v2 = vld [vmem:[%s2775_s1] sm:$0xff]   ;;  %v78_v10 = vlaneseq }
  0x1c   :  { %1831 = vmatprep.subr.bf16.mxu0 %v2193_v0  ;;  %1835 = vmatprep.mubr.msk.bf16.mxu0 %vm2194_vm0, %v2193_v0  ;;  %v2304_v3 = vld [vmem:[%s2774_s0] sm:$0xff]   ;;  %vm124_vm1 = vcmask 261120   ;;  %v2309_v4 = vld [vmem:[%s2779_s5 + $0x8] sm:$0xff]   ;;  %s2195_s25 = smov 32   ;;  %vm1011_vm4 = vcmask 523264   ;;  %vm1013_vm5 = vcmask 785408  }
  0x1d   :  { %1839 = vmatprep.subr.bf16.mxu1 %v2193_v0  ;;  %1843 = vmatprep.mubr.msk.bf16.mxu1 %vm2194_vm0, %v2193_v0  ;;  %v2315_v5 = vld [vmem:[%s2779_s5] sm:$0xff]   ;;  %v2338_v14 = vand.u32 127, %v78_v10  ;;  %v2007_v49 = vld [vmem:[%s2776_s2 + $0x8] sm:$0xff]  }
  0x1e   :  { %1832 = vmatpush3.bf16.msra.mxu0 %v2002_v1  ;;  %v237_v6 = vld [vmem:[%s2781_s7] sm:$0x3]  ;;  %1840 = vmatpush3.bf16.msra.mxu1 %v2007_v49 }
  0x1f   :  { %1833 = vmatprep.subr.bf16.mxu0 %v2193_v0  ;;  %v259_v7 = vpack.c.bf16 %v237_v6, %v237_v6  ;;  %v1717_v8 = vld [vmem:[%s2777_s3] ss:$0 sm:$0xff]  ;;  %v84_v17 = vand.u32 31, %v2338_v14  ;;  %1841 = vmatprep.subr.bf16.mxu1 %v2193_v0  ;;  %vm93_vm3 = vcmp.lt.s32.totalorder %v2338_v14, 16 }
  0x20   :  { %v238_v38 = vld [vmem:[%s2782_s8] sm:$0x3] }
  0x21   :  { %vm2341_vm2 = vcmp.lt.s32.totalorder %v84_v17, 16  ;;  %v2008_v50 = vld [vmem:[%s2776_s2] sm:$0xff]  }
  0x22   :  { %1834 = vmatpush3.bf16.msra.mxu0 %v2003_v2  ;;  %1842 = vmatpush3.bf16.msra.mxu1 %v2008_v50  ;;  %v1722_v55 = vld [vmem:[%s2778_s4] ss:$0 sm:$0xff] }
  0x23   :  { %1847 = vmatprep.subr.bf16.mxu0 %v2193_v0  ;;  %1855 = vmatprep.subr.bf16.mxu1 %v2193_v0 }
  0x25   :  { %1836 = vmatmul.mubr.msk.bf16.vlgmr.msra.gmra.mxu0 %vm124_vm1, %v2304_v3  ;;  %1844 = vmatmul.mubr.msk.bf16.vlgmr.msra.gmra.mxu1 %vm124_vm1, %v2304_v3 }
  0x26   :  { %1848 = vmatpush3.bf16.msra.mxu0 %v2309_v4  ;;  %1851 = vmatprep.mubr.msk.bf16.mxu0 %vm2194_vm0, %v2193_v0 }
  0x27   :  { %1849 = vmatprep.subr.bf16.mxu0 %v2193_v0  ;;  %1856 = vmatpush3.bf16.msra.mxu1 %v2309_v4 }
  0x28   :  { %1859 = vmatprep.mubr.msk.bf16.mxu1 %vm2194_vm0, %v2193_v0  ;;  %1857 = vmatprep.subr.bf16.mxu1 %v2193_v0 }
  0x2a   :  { %1850 = vmatpush3.bf16.msra.mxu0 %v2315_v5 }
  0x2b   :  { %1863 = vmatprep.subr.bf16.mxu0 %v2193_v0  ;;  %1858 = vmatpush3.bf16.msra.mxu1 %v2315_v5 }
  0x2c   :  { %1871 = vmatprep.subr.bf16.mxu1 %v2193_v0 }
  0x2d   :  { %1852 = vmatmul.mubr.msk.bf16.vlgmr.msra.gmra.mxu0 %vm124_vm1, %v259_v7 }
  0x2e   :  { %1864 = vmatpush3.bf16.msra.mxu0 %v2309_v4  ;;  %1867 = vmatprep.mubr.msk.bf16.mxu0 %vm2194_vm0, %v2193_v0 }
  0x2f   :  { %1865 = vmatprep.subr.bf16.mxu0 %v2193_v0 }
  0x32   :  { %1866 = vmatpush3.bf16.msra.mxu0 %v2315_v5 }
  0x33   :  { %1879 = vmatprep.subr.bf16.mxu0 %v2193_v0 }
  0xe5   :  { %v162_v9 = vpop.f32.mrf.mxu0  ;;  %v228_v56 = vpop.f32.mrf.mxu1 }
  0xe6   :  { %v163_v11 = vadd.f32 %v1717_v8, %v162_v9  ;;  %v229_v57 = vadd.f32 %v1722_v55, %v228_v56 }
  0xe7   :  { %v1837_v12 = vpop.f32.mrf.mxu0  ;;  %v1845_v58 = vpop.f32.mrf.mxu1 }
  0xe8   :  { %169 = vst [vmem:[#allocation2] sm:$0xff] %v163_v11  ;;  %235 = vst [vmem:[#allocation3] sm:$0xff] %v229_v57 }
  0xe9   :  { %v165_v13 = vpop.f32.mrf.mxu0  ;;  %v231_v59 = vpop.f32.mrf.mxu1 }
  0xea   :  { %v166_v15 = vadd.f32 %v1717_v8, %v165_v13  ;;  %v232_v60 = vadd.f32 %v1722_v55, %v231_v59 }
  0xeb   :  { %v1838_v16 = vpop.f32.mrf.mxu0  ;;  %v1846_v61 = vpop.f32.mrf.mxu1 }
  0xec   :  { %170 = vst [vmem:[#allocation2 + $0x8] sm:$0xff] %v166_v15  ;;  %236 = vst [vmem:[#allocation3 + $0x8] sm:$0xff] %v232_v60 }
  0xed   :  { %v309_v18 = vpop.f32.mrf.mxu0 }
  0xef   :  { %v1853_v19 = vpop.f32.mrf.mxu0  ;;  %v2345_v22 = vld [vmem:[#allocation2] sm:$0x3]  ;;  %v2347_v23 = vld [vmem:[#allocation2 + $0x4] sm:$0x3]  ;;  %v2359_v29 = vld [vmem:[#allocation2 + $0x2] sm:$0x3] }
  0xf0   :  { %v2361_v30 = vld [vmem:[#allocation2 + $0x6] sm:$0x3]  ;;  %v2418_v63 = vld [vmem:[#allocation3] sm:$0x3]  ;;  %v2422_v2 = vld [vmem:[#allocation3 + $0x2] sm:$0x3] }
  0xf1   :  { %v312_v21 = vpop.f32.mrf.mxu0  ;;  %v2426_v6 = vld [vmem:[#allocation3 + $0x4] sm:$0x3]  ;;  %v2434_v9 = vld [vmem:[#allocation3 + $0x6] sm:$0x3] }
  0xf3   :  { %v2349_v24 = vld [vmem:[#allocation2 + $0xe] sm:$0x3]  ;;  %v1854_v25 = vpop.f32.mrf.mxu0  ;;  %v2351_v26 = vld [vmem:[#allocation2 + $0xc] sm:$0x3]  ;;  %v2353_v27 = vld [vmem:[#allocation2 + $0xa] sm:$0x3] }
  0xf4   :  { %v245_v28 = vsel %vm2341_vm2, %v2345_v22, %v2349_v24  ;;  %v2363_v31 = vld [vmem:[#allocation2 + $0x8] sm:$0x3]  ;;  %v256_v32 = vsel %vm2341_vm2, %v2353_v27, %v2347_v23  ;;  %v257_v35 = vsel %vm2341_vm2, %v2351_v26, %v2359_v29  ;;  %v258_v36 = vsel %vm2341_vm2, %v2349_v24, %v2345_v22  ;;  %v2420_v1 = vld [vmem:[#allocation3 + $0xe] sm:$0x3]  ;;  %v2424_v3 = vld [vmem:[#allocation3 + $0xc] sm:$0x3] }
  0xf5   :  { %v315_v33 = vadd.f32 %v309_v18, %v245_v28  ;;  %v255_v34 = vsel %vm2341_vm2, %v2363_v31, %v2361_v30  ;;  %v2428_v7 = vld [vmem:[#allocation3 + $0xa] sm:$0x3]  ;;  %v1035_v8 = vsel %vm2341_vm2, %v2420_v1, %v2418_v63  ;;  %v2436_v10 = vld [vmem:[#allocation3 + $0x8] sm:$0x3]  ;;  %v1034_v12 = vsel %vm2341_vm2, %v2424_v3, %v2422_v2 }
  0xf6   :  { %v1033_v11 = vsel %vm2341_vm2, %v2428_v7, %v2426_v6  ;;  %v1032_v13 = vsel %vm2341_vm2, %v2436_v10, %v2434_v9  ;;  %v248_v15 = vsel %vm2341_vm2, %v2359_v29, %v2351_v26 }
  0xf7   :  { %2015 = vtanh.f32 %v315_v33  ;;  %v1729_v39 = vmul.f32 -1.442695, %v315_v33 }
  0xf9   :  { %2017 = vpow2.f32 %v1729_v39 }
 0x104   :  { %v2016_v37 = vpop.eup %2015 }
 0x105   :  { %329 = vrot.lane.b32.xlu0 %v2016_v37, %s2190_s21 }
 0x106   :  { %v2018_v40 = vpop.eup %2017 }
 0x107   :  { %v319_v41 = vadd.f32 1.0, %v2018_v40 }
 0x109   :  { %324 = vrot.lane.b32.xlu0 %v238_v38, %s2195_s25  ;;  %2019 = vrcp.f32 %v319_v41 }
 0x116   :  { %v2020_v42 = vpop.eup %2019 }
 0x177   :  { %v330_v43 = vpop.permute.xlu0 %329 }
 0x178   :  { %v332_v44 = vmul.f32 %v2020_v42, %v330_v43 }
 0x17a   :  { %334 = vrot.lane.b32.xlu1 %v332_v44, %s2195_s25 }
 0x17b   :  { %v325_v45 = vpop.permute.xlu0 %324 }
 0x17c   :  { %v327_v46 = vmul.f32 %v2020_v42, %v325_v45 }
 0x1ec   :  { %v335_v47 = vpop.permute.xlu1 %334 }
 0x1ed   :  { %v2387_v48 = vadd.f32 %v335_v47, %v327_v46 }
 0x1ef   :  { %2021 = vtanh.f32 %v2387_v48 }
 0x1fc   :  { %v2022_v51 = vpop.eup %2021 }
 0x1fd   :  { %340 = vrot.lane.b32.xlu1 %v2022_v51, %s2190_s21 }
 0x26f   :  { %v341_v52 = vpop.permute.xlu1 %340 }
 0x270   :  { %v343_v53 = vmul.f32 %v2020_v42, %v341_v52 }
 0x272   :  { %v344_v54 = vpack.c.bf16 %v343_v53, %v343_v53 }
 0x274   :  { %346 = vrot.lane.b32.xlu0 %v344_v54, %s2195_s25 }
 0x2e6   :  { %v347_v62 = vpop.permute.xlu0 %346 }
 0x2e7   :  { %1860 = vmatmul.mubr.msk.bf16.vlgmr.msra.gmra.mxu1 %vm124_vm1, %v347_v62 }
 0x2e8   :  { %1872 = vmatpush3.bf16.msra.mxu1 %v2309_v4  ;;  %1875 = vmatprep.mubr.msk.bf16.mxu1 %vm2194_vm0, %v2193_v0 }
 0x2e9   :  { %1873 = vmatprep.subr.bf16.mxu1 %v2193_v0 }
 0x2ec   :  { %1874 = vmatpush3.bf16.msra.mxu1 %v2315_v5 }
 0x2ed   :  { %1887 = vmatprep.subr.bf16.mxu1 %v2193_v0 }
 0x3a7   :  { %v385_v16 = vpop.f32.mrf.mxu1 }
 0x3a8   :  { %v391_v17 = vadd.f32 %v385_v16, %v248_v15 }
 0x3a9   :  { %v1861_v18 = vpop.f32.mrf.mxu1 }
 0x3aa   :  { %2023 = vtanh.f32 %v391_v17  ;;  %v1731_v28 = vmul.f32 -1.442695, %v391_v17 }
 0x3ab   :  { %v388_v19 = vpop.f32.mrf.mxu1 }
 0x3ac   :  { %2025 = vpow2.f32 %v1731_v28  ;;  %v254_v28 = vsel %vm2341_vm2, %v2361_v30, %v2363_v31 }
 0x3ad   :  { %v1862_v21 = vpop.f32.mrf.mxu1 }
 0x3b7   :  { %v2024_v25 = vpop.eup %2023 }
 0x3b8   :  { %401 = vrot.lane.b32.xlu1 %v2024_v25, %s2190_s21 }
 0x3b9   :  { %v2026_v33 = vpop.eup %2025 }
 0x3ba   :  { %v395_v37 = vadd.f32 1.0, %v2026_v33 }
 0x3bc   :  { %2027 = vrcp.f32 %v395_v37 }
 0x3c9   :  { %v2028_v38 = vpop.eup %2027 }
 0x3ca   :  { %v399_v41 = vmul.f32 %v2028_v38, %v2387_v48  ;;  %v251_v48 = vsel %vm2341_vm2, %v2347_v23, %v2353_v27 }
 0x42a   :  { %v402_v39 = vpop.permute.xlu1 %401 }
 0x42b   :  { %v404_v40 = vmul.f32 %v2028_v38, %v402_v39 }
 0x42d   :  { %406 = vrot.lane.b32.xlu0 %v404_v40, %s2195_s25 }
 0x49f   :  { %v407_v42 = vpop.permute.xlu0 %406 }
 0x4a0   :  { %v409_v43 = vadd.f32 %v407_v42, %v399_v41 }
 0x4a2   :  { %2029 = vtanh.f32 %v409_v43 }
 0x4af   :  { %v2030_v44 = vpop.eup %2029 }
 0x4b0   :  { %412 = vrot.lane.b32.xlu1 %v2030_v44, %s2190_s21 }
 0x522   :  { %v413_v45 = vpop.permute.xlu1 %412 }
 0x523   :  { %v415_v46 = vmul.f32 %v2028_v38, %v413_v45 }
 0x525   :  { %v416_v47 = vpack.c.bf16 %v415_v46, %v415_v46 }
 0x527   :  { %418 = vrot.lane.b32.xlu0 %v416_v47, %s2195_s25 }
 0x599   :  { %v419_v49 = vpop.permute.xlu0 %418 }
 0x59a   :  { %1868 = vmatmul.mubr.msk.bf16.vlgmr.msra.gmra.mxu0 %vm124_vm1, %v419_v49 }
 0x59b   :  { %1880 = vmatpush3.bf16.msra.mxu0 %v2309_v4  ;;  %1883 = vmatprep.mubr.msk.bf16.mxu0 %vm2194_vm0, %v2193_v0 }
 0x59c   :  { %1881 = vmatprep.subr.bf16.mxu0 %v2193_v0 }
 0x59f   :  { %1882 = vmatpush3.bf16.msra.mxu0 %v2315_v5 }
 0x5a0   :  { %1895 = vmatprep.subr.bf16.mxu0 %v2193_v0 }
 0x65a   :  { %v457_v50 = vpop.f32.mrf.mxu0 }
 0x65b   :  { %v463_v51 = vadd.f32 %v457_v50, %v251_v48 }
 0x65c   :  { %v1869_v52 = vpop.f32.mrf.mxu0 }
 0x65d   :  { %2031 = vtanh.f32 %v463_v51  ;;  %v1733_v56 = vmul.f32 -1.442695, %v463_v51 }
 0x65e   :  { %v460_v53 = vpop.f32.mrf.mxu0 }
 0x65f   :  { %2033 = vpow2.f32 %v1733_v56 }
 0x660   :  { %v1870_v54 = vpop.f32.mrf.mxu0 }
 0x66a   :  { %v2032_v55 = vpop.eup %2031 }
 0x66b   :  { %473 = vrot.lane.b32.xlu1 %v2032_v55, %s2190_s21 }
 0x66c   :  { %v2034_v57 = vpop.eup %2033 }
 0x66d   :  { %v467_v58 = vadd.f32 1.0, %v2034_v57 }
 0x66f   :  { %2035 = vrcp.f32 %v467_v58 }
 0x67c   :  { %v2036_v59 = vpop.eup %2035 }
 0x67d   :  { %v471_v62 = vmul.f32 %v2036_v59, %v409_v43 }
 0x6dd   :  { %v474_v60 = vpop.permute.xlu1 %473 }
 0x6de   :  { %v476_v61 = vmul.f32 %v2036_v59, %v474_v60 }
 0x6e0   :  { %478 = vrot.lane.b32.xlu0 %v476_v61, %s2195_s25 }
 0x752   :  { %v479_v15 = vpop.permute.xlu0 %478 }
 0x753   :  { %v481_v16 = vadd.f32 %v479_v15, %v471_v62 }
 0x755   :  { %2037 = vtanh.f32 %v481_v16 }
 0x762   :  { %v2038_v17 = vpop.eup %2037 }
 0x763   :  { %484 = vrot.lane.b32.xlu1 %v2038_v17, %s2190_s21 }
 0x7d5   :  { %v485_v18 = vpop.permute.xlu1 %484 }
 0x7d6   :  { %v487_v19 = vmul.f32 %v2036_v59, %v485_v18 }
 0x7d8   :  { %v488_v21 = vpack.c.bf16 %v487_v19, %v487_v19 }
 0x7da   :  { %490 = vrot.lane.b32.xlu0 %v488_v21, %s2195_s25 }
 0x84c   :  { %v491_v25 = vpop.permute.xlu0 %490 }
 0x84d   :  { %1876 = vmatmul.mubr.msk.bf16.vlgmr.msra.gmra.mxu1 %vm124_vm1, %v491_v25 }
 0x84e   :  { %1888 = vmatpush3.bf16.msra.mxu1 %v2309_v4  ;;  %1891 = vmatprep.mubr.msk.bf16.mxu1 %vm2194_vm0, %v2193_v0 }
 0x84f   :  { %1889 = vmatprep.subr.bf16.mxu1 %v2193_v0 }
 0x852   :  { %1890 = vmatpush3.bf16.msra.mxu1 %v2315_v5 }
 0x853   :  { %1903 = vmatprep.subr.bf16.mxu1 %v2193_v0 }
 0x90d   :  { %v529_v33 = vpop.f32.mrf.mxu1 }
 0x90e   :  { %v535_v37 = vadd.f32 %v529_v33, %v254_v28 }
 0x90f   :  { %v1877_v38 = vpop.f32.mrf.mxu1 }
 0x910   :  { %2039 = vtanh.f32 %v535_v37  ;;  %v1735_v42 = vmul.f32 -1.442695, %v535_v37 }
 0x911   :  { %v532_v39 = vpop.f32.mrf.mxu1 }
 0x912   :  { %2041 = vpow2.f32 %v1735_v42 }
 0x913   :  { %v1878_v40 = vpop.f32.mrf.mxu1 }
 0x91d   :  { %v2040_v41 = vpop.eup %2039 }
 0x91e   :  { %545 = vrot.lane.b32.xlu1 %v2040_v41, %s2190_s21 }
 0x91f   :  { %v2042_v43 = vpop.eup %2041 }
 0x920   :  { %v539_v44 = vadd.f32 1.0, %v2042_v43 }
 0x922   :  { %2043 = vrcp.f32 %v539_v44 }
 0x92f   :  { %v2044_v45 = vpop.eup %2043 }
 0x930   :  { %v543_v49 = vmul.f32 %v2044_v45, %v481_v16 }
 0x990   :  { %v546_v46 = vpop.permute.xlu1 %545 }
 0x991   :  { %v548_v47 = vmul.f32 %v2044_v45, %v546_v46 }
 0x993   :  { %550 = vrot.lane.b32.xlu0 %v548_v47, %s2195_s25 }
 0xa05   :  { %v551_v48 = vpop.permute.xlu0 %550 }
 0xa06   :  { %v553_v50 = vadd.f32 %v551_v48, %v543_v49 }
 0xa08   :  { %2045 = vtanh.f32 %v553_v50 }
 0xa15   :  { %v2046_v51 = vpop.eup %2045 }
 0xa16   :  { %556 = vrot.lane.b32.xlu1 %v2046_v51, %s2190_s21 }
 0xa88   :  { %v557_v52 = vpop.permute.xlu1 %556 }
 0xa89   :  { %v559_v53 = vmul.f32 %v2044_v45, %v557_v52 }
 0xa8b   :  { %v560_v54 = vpack.c.bf16 %v559_v53, %v559_v53 }
 0xa8d   :  { %562 = vrot.lane.b32.xlu0 %v560_v54, %s2195_s25 }
 0xaff   :  { %v563_v55 = vpop.permute.xlu0 %562 }
 0xb00   :  { %1884 = vmatmul.mubr.msk.bf16.vlgmr.msra.gmra.mxu0 %vm124_vm1, %v563_v55 }
 0xb01   :  { %1896 = vmatpush3.bf16.msra.mxu0 %v2309_v4  ;;  %1899 = vmatprep.mubr.msk.bf16.mxu0 %vm2194_vm0, %v2193_v0 }
 0xb02   :  { %1897 = vmatprep.subr.bf16.mxu0 %v2193_v0 }
 0xb05   :  { %1898 = vmatpush3.bf16.msra.mxu0 %v2315_v5 }
 0xb06   :  { %1911 = vmatprep.subr.bf16.mxu0 %v2193_v0 }
 0xbc0   :  { %v601_v56 = vpop.f32.mrf.mxu0 }
 0xbc1   :  { %v607_v57 = vadd.f32 %v601_v56, %v255_v34 }
 0xbc2   :  { %v1885_v58 = vpop.f32.mrf.mxu0 }
 0xbc3   :  { %2047 = vtanh.f32 %v607_v57  ;;  %v1737_v62 = vmul.f32 -1.442695, %v607_v57 }
 0xbc4   :  { %v604_v59 = vpop.f32.mrf.mxu0 }
 0xbc5   :  { %2049 = vpow2.f32 %v1737_v62 }
 0xbc6   :  { %v1886_v60 = vpop.f32.mrf.mxu0 }
 0xbd0   :  { %v2048_v61 = vpop.eup %2047 }
 0xbd1   :  { %617 = vrot.lane.b32.xlu1 %v2048_v61, %s2190_s21 }
 0xbd2   :  { %v2050_v15 = vpop.eup %2049 }
 0xbd3   :  { %v611_v16 = vadd.f32 1.0, %v2050_v15 }
 0xbd5   :  { %2051 = vrcp.f32 %v611_v16 }
 0xbe2   :  { %v2052_v17 = vpop.eup %2051 }
 0xbe3   :  { %v615_v21 = vmul.f32 %v2052_v17, %v553_v50 }
 0xc43   :  { %v618_v18 = vpop.permute.xlu1 %617 }
 0xc44   :  { %v620_v19 = vmul.f32 %v2052_v17, %v618_v18 }
 0xc46   :  { %622 = vrot.lane.b32.xlu0 %v620_v19, %s2195_s25 }
 0xcb8   :  { %v623_v30 = vpop.permute.xlu0 %622 }
 0xcb9   :  { %v625_v31 = vadd.f32 %v623_v30, %v615_v21 }
 0xcbb   :  { %2053 = vtanh.f32 %v625_v31 }
 0xcc8   :  { %v2054_v34 = vpop.eup %2053 }
 0xcc9   :  { %628 = vrot.lane.b32.xlu1 %v2054_v34, %s2190_s21 }
 0xd3b   :  { %v629_v25 = vpop.permute.xlu1 %628 }
 0xd3c   :  { %v631_v28 = vmul.f32 %v2052_v17, %v629_v25 }
 0xd3e   :  { %v632_v33 = vpack.c.bf16 %v631_v28, %v631_v28 }
 0xd40   :  { %634 = vrot.lane.b32.xlu0 %v632_v33, %s2195_s25 }
 0xdb2   :  { %v635_v37 = vpop.permute.xlu0 %634 }
 0xdb3   :  { %1892 = vmatmul.mubr.msk.bf16.vlgmr.msra.gmra.mxu1 %vm124_vm1, %v635_v37 }
 0xdb4   :  { %1904 = vmatpush3.bf16.msra.mxu1 %v2309_v4  ;;  %1907 = vmatprep.mubr.msk.bf16.mxu1 %vm2194_vm0, %v2193_v0 }
 0xdb5   :  { %1905 = vmatprep.subr.bf16.mxu1 %v2193_v0 }
 0xdb8   :  { %1906 = vmatpush3.bf16.msra.mxu1 %v2315_v5 }
 0xdb9   :  { %1919 = vmatprep.subr.bf16.mxu1 %v2193_v0 }
 0xe73   :  { %v673_v38 = vpop.f32.mrf.mxu1 }
 0xe74   :  { %v679_v39 = vadd.f32 %v673_v38, %v256_v32 }
 0xe75   :  { %v1893_v40 = vpop.f32.mrf.mxu1 }
 0xe76   :  { %2055 = vtanh.f32 %v679_v39  ;;  %v1739_v43 = vmul.f32 -1.442695, %v679_v39 }
 0xe77   :  { %v676_v41 = vpop.f32.mrf.mxu1 }
 0xe78   :  { %2057 = vpow2.f32 %v1739_v43 }
 0xe79   :  { %v1894_v4 = vpop.f32.mrf.mxu1 }
 0xe83   :  { %v2056_v42 = vpop.eup %2055 }
 0xe84   :  { %689 = vrot.lane.b32.xlu1 %v2056_v42, %s2190_s21 }
 0xe85   :  { %v2058_v44 = vpop.eup %2057 }
 0xe86   :  { %v683_v5 = vadd.f32 1.0, %v2058_v44  ;;  %v2010_v44 = vld [vmem:[#allocation4] sm:$0xff]  }
 0xe88   :  { %2059 = vrcp.f32 %v683_v5 }
 0xe95   :  { %v2060_v45 = vpop.eup %2059 }
 0xe96   :  { %v687_v49 = vmul.f32 %v2060_v45, %v625_v31 }
 0xef6   :  { %v690_v46 = vpop.permute.xlu1 %689 }
 0xef7   :  { %v692_v47 = vmul.f32 %v2060_v45, %v690_v46  ;;  %v2196_v46 = vmov 0  }
 0xef8   :  { %2000 = vset.pattern.permute.xlu1 %v2196_v46  ;;  %2001 = vset.pattern.permute.xlu0 %v2196_v46 }
 0xef9   :  { %694 = vrot.lane.b32.xlu0 %v692_v47, %s2195_s25 }
 0xf6b   :  { %v695_v23 = vpop.permute.xlu0 %694 }
 0xf6c   :  { %v697_v27 = vadd.f32 %v695_v23, %v687_v49 }
 0xf6e   :  { %2061 = vtanh.f32 %v697_v27 }
 0xf7b   :  { %v2062_v32 = vpop.eup %2061 }
 0xf7c   :  { %700 = vrot.lane.b32.xlu1 %v2062_v32, %s2190_s21  ;;  %v2011_v32 = vld [vmem:[#allocation6 + $0x8] sm:$0xff]  }
 0xfee   :  { %v701_v48 = vpop.permute.xlu1 %700 }
 0xfef   :  { %v703_v50 = vmul.f32 %v2060_v45, %v701_v48  ;;  %v918_v45 = vld [vmem:[%s2783_s9] sm:$0x3]  ;;  %v2012_v48 = vld [vmem:[#allocation6] sm:$0xff]  }
 0xff1   :  { %v704_v51 = vpack.c.bf16 %v703_v50, %v703_v50  ;;  %v1744_v50 = vld [vmem:[%s2785_s11] ss:$0 sm:$0xff]  ;;  %s2197_s11 = smov 96  }
 0xff3   :  { %706 = vrot.lane.b32.xlu0 %v704_v51, %s2195_s25 }
0x1065   :  { %v707_v52 = vpop.permute.xlu0 %706 }
0x1066   :  { %1900 = vmatmul.mubr.msk.bf16.vlgmr.msra.gmra.mxu0 %vm124_vm1, %v707_v52 }
0x1067   :  { %1915 = vmatprep.mubr.msk.bf16.mxu0 %vm2194_vm0, %v2193_v0 }
0x1126   :  { %v745_v53 = vpop.f32.mrf.mxu0 }
0x1127   :  { %v751_v54 = vadd.f32 %v745_v53, %v257_v35 }
0x1128   :  { %v1901_v55 = vpop.f32.mrf.mxu0 }
0x1129   :  { %2063 = vtanh.f32 %v751_v54  ;;  %v1741_v59 = vmul.f32 -1.442695, %v751_v54 }
0x112a   :  { %v748_v56 = vpop.f32.mrf.mxu0 }
0x112b   :  { %2065 = vpow2.f32 %v1741_v59 }
0x112c   :  { %v1902_v57 = vpop.f32.mrf.mxu0 }
0x1136   :  { %v2064_v58 = vpop.eup %2063 }
0x1137   :  { %761 = vrot.lane.b32.xlu1 %v2064_v58, %s2190_s21  ;;  %v2573_v58 = vld [vmem:[%s2780_s6 + $0x8] sm:$0xff]  }
0x1138   :  { %v2066_v60 = vpop.eup %2065 }
0x1139   :  { %v755_v61 = vadd.f32 1.0, %v2066_v60 }
0x113b   :  { %2067 = vrcp.f32 %v755_v61 }
0x1148   :  { %v2068_v62 = vpop.eup %2067 }
0x1149   :  { %v759_v17 = vmul.f32 %v2068_v62, %v697_v27 }
0x11a9   :  { %v762_v15 = vpop.permute.xlu1 %761 }
0x11aa   :  { %v764_v16 = vmul.f32 %v2068_v62, %v762_v15 }
0x11ac   :  { %766 = vrot.lane.b32.xlu0 %v764_v16, %s2195_s25 }
0x121e   :  { %v767_v26 = vpop.permute.xlu0 %766 }
0x121f   :  { %v769_v29 = vadd.f32 %v767_v26, %v759_v17  ;;  %v2586_v26 = vld [vmem:[%s2780_s6] sm:$0xff]  }
0x1221   :  { %2069 = vtanh.f32 %v769_v29 }
0x122e   :  { %v2070_v35 = vpop.eup %2069 }
0x122f   :  { %772 = vrot.lane.b32.xlu1 %v2070_v35, %s2190_s21 }
0x12a1   :  { %v773_v18 = vpop.permute.xlu1 %772 }
0x12a2   :  { %v775_v19 = vmul.f32 %v2068_v62, %v773_v18 }
0x12a4   :  { %v776_v21 = vpack.c.bf16 %v775_v19, %v775_v19 }
0x12a6   :  { %778 = vrot.lane.b32.xlu0 %v776_v21, %s2195_s25 }
0x1318   :  { %v779_v30 = vpop.permute.xlu0 %778 }
0x1319   :  { %1908 = vmatmul.mubr.msk.bf16.vlgmr.msra.gmra.mxu1 %vm124_vm1, %v779_v30 }
0x131a   :  { %1923 = vmatprep.mubr.msk.bf16.mxu1 %vm2194_vm0, %v2193_v0  ;;  %1920 = vmatpush3.bf16.msra.mxu1 %v2011_v32 }
0x131b   :  { %1921 = vmatprep.subr.bf16.mxu1 %v2193_v0 }
0x131e   :  { %1922 = vmatpush3.bf16.msra.mxu1 %v2012_v48  ;;  %v1025_v48 = vsel %vm2341_vm2, %v2422_v2, %v2424_v3 }
0x131f   :  { %1935 = vmatprep.subr.bf16.mxu1 %v2193_v0 }
0x13d9   :  { %v817_v31 = vpop.f32.mrf.mxu1 }
0x13da   :  { %v823_v34 = vadd.f32 %v817_v31, %v258_v36  ;;  %v2009_v36 = vld [vmem:[#allocation4 + $0x8] sm:$0xff]  }
0x13db   :  { %v1909_v25 = vpop.f32.mrf.mxu1  ;;  %1912 = vmatpush3.bf16.msra.mxu0 %v2009_v36 }
0x13dc   :  { %2071 = vtanh.f32 %v823_v34  ;;  %v1743_v38 = vmul.f32 -1.442695, %v823_v34  ;;  %1913 = vmatprep.subr.bf16.mxu0 %v2193_v0  ;;  %v1022_v34 = vsel %vm2341_vm2, %v2418_v63, %v2420_v1 }
0x13dd   :  { %v820_v28 = vpop.f32.mrf.mxu1 }
0x13de   :  { %2073 = vpow2.f32 %v1743_v38 }
0x13df   :  { %v1910_v33 = vpop.f32.mrf.mxu1  ;;  %1914 = vmatpush3.bf16.msra.mxu0 %v2010_v44 }
0x13e0   :  { %1927 = vmatprep.subr.bf16.mxu0 %v2193_v0 }
0x13e9   :  { %v2072_v37 = vpop.eup %2071 }
0x13ea   :  { %833 = vrot.lane.b32.xlu1 %v2072_v37, %s2190_s21 }
0x13eb   :  { %v2074_v39 = vpop.eup %2073 }
0x13ec   :  { %v827_v40 = vadd.f32 1.0, %v2074_v39 }
0x13ee   :  { %2075 = vrcp.f32 %v827_v40 }
0x13fb   :  { %v2076_v41 = vpop.eup %2075 }
0x13fc   :  { %v831_v43 = vmul.f32 %v2076_v41, %v769_v29  ;;  %v1748_v29 = vld [vmem:[%s2787_s13] ss:$0 sm:$0xff] }
0x145c   :  { %v834_v4 = vpop.permute.xlu1 %833 }
0x145d   :  { %v836_v42 = vmul.f32 %v2076_v41, %v834_v4 }
0x145f   :  { %838 = vrot.lane.b32.xlu0 %v836_v42, %s2195_s25 }
0x14d1   :  { %v839_v22 = vpop.permute.xlu0 %838 }
0x14d2   :  { %v2543_v24 = vadd.f32 %v839_v22, %v831_v43 }
0x14d4   :  { %2077 = vtanh.f32 %v2543_v24 }
0x14e1   :  { %v2078_v5 = vpop.eup %2077 }
0x14e2   :  { %844 = vrot.lane.b32.xlu1 %v2078_v5, %s2190_s21 }
0x14e6   :  { %924 = vperm.xlu1 %2000, %v918_v45  }
0x1554   :  { %v845_v47 = vpop.permute.xlu1 %844 }
0x1555   :  { %v2552_v49 = vmul.f32 %v2076_v41, %v845_v47 }
0x1557   :  { %v848_v23 = vpack.c.bf16 %v2552_v49, %v2552_v49 }
0x1559   :  { %861 = vrot.lane.b32.xlu0 %v848_v23, %s2195_s25 }
0x1561   :  { %v925_v60 = vpop.permute.xlu1 %924 }
0x15cb   :  { %v862_v27 = vpop.permute.xlu0 %861 }
0x15cc   :  { %1916 = vmatmul.mubr.msk.bf16.vlgmr.msra.gmra.mxu0 %vm124_vm1, %v862_v27 }
0x15cd   :  { %1931 = vmatprep.mubr.msk.bf16.mxu0 %vm2194_vm0, %v2193_v0  ;;  %1928 = vmatpush3.bf16.msra.mxu0 %v2573_v58 }
0x15ce   :  { %1929 = vmatprep.subr.bf16.mxu0 %v2193_v0 }
0x15d1   :  { %1930 = vmatpush3.bf16.msra.mxu0 %v2586_v26 }
0x15d2   :  { %1943 = vmatprep.subr.bf16.mxu0 %v2193_v0 }
0x168c   :  { %v912_v51 = vpop.f32.mrf.mxu0 }
0x168d   :  { %v2564_v52 = vadd.f32 %v1744_v50, %v912_v51 }
0x168e   :  { %v1917_v53 = vpop.f32.mrf.mxu0 }
0x168f   :  { %929 = vrot.lane.b32.xlu0 %v2564_v52, %s2195_s25  ;;  %v919_v56 = vmul.f32 0.5, %v2564_v52 }
0x1690   :  { %v915_v54 = vpop.f32.mrf.mxu0 }
0x1691   :  { %v920_v57 = vmul.f32 1.442695, %v919_v56 }
0x1692   :  { %v1918_v55 = vpop.f32.mrf.mxu0 }
0x1693   :  { %2079 = vpow2.f32 %v920_v57 }
0x16a0   :  { %v2080_v59 = vpop.eup %2079 }
0x16a1   :  { %v927_v61 = vmul.f32 %v2080_v59, %v925_v60 }
0x1701   :  { %v930_v62 = vpop.permute.xlu0 %929 }
0x1702   :  { %v932_v15 = vadd.f32 %v930_v62, %v927_v61 }
0x1704   :  { %v933_v16 = vpack.c.bf16 %v932_v15, %v932_v15 }
0x1706   :  { %946 = vrot.lane.b32.xlu1 %v933_v16, %s2197_s11 }
0x1778   :  { %v947_v17 = vpop.permute.xlu1 %946 }
0x1779   :  { %1924 = vmatmul.mubr.msk.bf16.vlgmr.msra.gmra.mxu1 %vm124_vm1, %v947_v17 }
0x177a   :  { %1936 = vmatpush3.bf16.msra.mxu1 %v2573_v58  ;;  %1939 = vmatprep.mubr.msk.bf16.mxu1 %vm2194_vm0, %v2193_v0 }
0x177b   :  { %1937 = vmatprep.subr.bf16.mxu1 %v2193_v0 }
0x177e   :  { %1938 = vmatpush3.bf16.msra.mxu1 %v2586_v26 }
0x177f   :  { %1951 = vmatprep.subr.bf16.mxu1 %v2193_v0 }
0x1839   :  { %v997_v35 = vpop.f32.mrf.mxu1 }
0x183a   :  { %v998_v18 = vadd.f32 %v1748_v29, %v997_v35 }
0x183b   :  { %v1925_v19 = vpop.f32.mrf.mxu1 }
0x183c   :  { %v1036_v21 = vpack.c.bf16 %v998_v18, %v998_v18  ;;  %1101 = vrot.lane.b32.xlu1 %v998_v18, %s2195_s25 }
0x183d   :  { %v1000_v30 = vpop.f32.mrf.mxu1 }
0x183e   :  { %1932 = vmatmul.mubr.msk.bf16.vlgmr.msra.gmra.mxu0 %vm124_vm1, %v1036_v21 }
0x183f   :  { %v1926_v31 = vpop.f32.mrf.mxu1  ;;  %1944 = vmatpush3.bf16.msra.mxu0 %v2573_v58  ;;  %1947 = vmatprep.mubr.msk.bf16.mxu0 %vm2194_vm0, %v2193_v0 }
0x1840   :  { %1945 = vmatprep.subr.bf16.mxu0 %v2193_v0  ;;  %v1028_v31 = vsel %vm2341_vm2, %v2426_v6, %v2428_v7 }
0x1843   :  { %1946 = vmatpush3.bf16.msra.mxu0 %v2586_v26 }
0x1844   :  { %1959 = vmatprep.subr.bf16.mxu0 %v2193_v0 }
0x18ae   :  { %v1102_v36 = vpop.permute.xlu1 %1101 }
0x18fe   :  { %v1086_v25 = vpop.f32.mrf.mxu0 }
0x18ff   :  { %v1092_v28 = vadd.f32 %v1086_v25, %v1022_v34 }
0x1900   :  { %v1933_v33 = vpop.f32.mrf.mxu0 }
0x1901   :  { %2081 = vtanh.f32 %v1092_v28  ;;  %v1755_v40 = vmul.f32 -1.442695, %v1092_v28 }
0x1902   :  { %v1089_v37 = vpop.f32.mrf.mxu0 }
0x1903   :  { %2083 = vpow2.f32 %v1755_v40 }
0x1904   :  { %v1934_v38 = vpop.f32.mrf.mxu0 }
0x190e   :  { %v2082_v39 = vpop.eup %2081 }
0x190f   :  { %1106 = vrot.lane.b32.xlu0 %v2082_v39, %s2190_s21 }
0x1910   :  { %v2084_v41 = vpop.eup %2083 }
0x1911   :  { %v1096_v4 = vadd.f32 1.0, %v2084_v41 }
0x1913   :  { %2085 = vrcp.f32 %v1096_v4 }
0x1920   :  { %v2086_v42 = vpop.eup %2085 }
0x1921   :  { %v1104_v44 = vmul.f32 %v2086_v42, %v1102_v36 }
0x1981   :  { %v1107_v43 = vpop.permute.xlu0 %1106 }
0x1982   :  { %v1109_v22 = vmul.f32 %v2086_v42, %v1107_v43 }
0x1984   :  { %1111 = vrot.lane.b32.xlu0 %v1109_v22, %s2195_s25 }
0x19f6   :  { %v1112_v5 = vpop.permute.xlu0 %1111 }
0x19f7   :  { %v1114_v45 = vadd.f32 %v1112_v5, %v1104_v44 }
0x19f9   :  { %2087 = vtanh.f32 %v1114_v45 }
0x1a06   :  { %v2088_v46 = vpop.eup %2087 }
0x1a07   :  { %1117 = vrot.lane.b32.xlu1 %v2088_v46, %s2190_s21 }
0x1a79   :  { %v1118_v47 = vpop.permute.xlu1 %1117 }
0x1a7a   :  { %v2610_v23 = vmul.f32 %v2086_v42, %v1118_v47 }
0x1a7c   :  { %v1121_v27 = vpack.c.bf16 %v2610_v23, %v2610_v23 }
0x1a7e   :  { %1123 = vrot.lane.b32.xlu0 %v1121_v27, %s2195_s25 }
0x1af0   :  { %v1124_v32 = vpop.permute.xlu0 %1123 }
0x1af1   :  { %1940 = vmatmul.mubr.msk.bf16.vlgmr.msra.gmra.mxu1 %vm124_vm1, %v1124_v32  ;;  %v1031_v32 = vsel %vm2341_vm2, %v2434_v9, %v2436_v10 }
0x1af2   :  { %1952 = vmatpush3.bf16.msra.mxu1 %v2573_v58  ;;  %1955 = vmatprep.mubr.msk.bf16.mxu1 %vm2194_vm0, %v2193_v0 }
0x1af3   :  { %1953 = vmatprep.subr.bf16.mxu1 %v2193_v0 }
0x1af6   :  { %1954 = vmatpush3.bf16.msra.mxu1 %v2586_v26 }
0x1af7   :  { %1967 = vmatprep.subr.bf16.mxu1 %v2193_v0 }
0x1bb1   :  { %v1162_v50 = vpop.f32.mrf.mxu1 }
0x1bb2   :  { %v1168_v51 = vadd.f32 %v1162_v50, %v1025_v48 }
0x1bb3   :  { %v1941_v53 = vpop.f32.mrf.mxu1 }
0x1bb4   :  { %2089 = vtanh.f32 %v1168_v51  ;;  %v1757_v57 = vmul.f32 -1.442695, %v1168_v51 }
0x1bb5   :  { %v1165_v54 = vpop.f32.mrf.mxu1 }
0x1bb6   :  { %2091 = vpow2.f32 %v1757_v57 }
0x1bb7   :  { %v1942_v55 = vpop.f32.mrf.mxu1 }
0x1bc1   :  { %v2090_v56 = vpop.eup %2089 }
0x1bc2   :  { %1178 = vrot.lane.b32.xlu1 %v2090_v56, %s2190_s21 }
0x1bc3   :  { %v2092_v59 = vpop.eup %2091 }
0x1bc4   :  { %v1172_v60 = vadd.f32 1.0, %v2092_v59 }
0x1bc6   :  { %2093 = vrcp.f32 %v1172_v60 }
0x1bd3   :  { %v2094_v61 = vpop.eup %2093 }
0x1bd4   :  { %v1176_v16 = vmul.f32 %v2094_v61, %v1114_v45 }
0x1c34   :  { %v1179_v62 = vpop.permute.xlu1 %1178 }
0x1c35   :  { %v1181_v15 = vmul.f32 %v2094_v61, %v1179_v62 }
0x1c37   :  { %1183 = vrot.lane.b32.xlu0 %v1181_v15, %s2195_s25 }
0x1ca9   :  { %v1184_v17 = vpop.permute.xlu0 %1183 }
0x1caa   :  { %v1186_v29 = vadd.f32 %v1184_v17, %v1176_v16 }
0x1cac   :  { %2095 = vtanh.f32 %v1186_v29 }
0x1cb9   :  { %v2096_v35 = vpop.eup %2095 }
0x1cba   :  { %1189 = vrot.lane.b32.xlu1 %v2096_v35, %s2190_s21 }
0x1d2c   :  { %v1190_v18 = vpop.permute.xlu1 %1189 }
0x1d2d   :  { %v2629_v19 = vmul.f32 %v2094_v61, %v1190_v18 }
0x1d2f   :  { %v1193_v21 = vpack.c.bf16 %v2629_v19, %v2629_v19 }
0x1d31   :  { %1195 = vrot.lane.b32.xlu0 %v1193_v21, %s2195_s25 }
0x1da3   :  { %v1196_v30 = vpop.permute.xlu0 %1195 }
0x1da4   :  { %1948 = vmatmul.mubr.msk.bf16.vlgmr.msra.gmra.mxu0 %vm124_vm1, %v1196_v30 }
0x1da5   :  { %1960 = vmatpush3.bf16.msra.mxu0 %v2573_v58  ;;  %1963 = vmatprep.mubr.msk.bf16.mxu0 %vm2194_vm0, %v2193_v0 }
0x1da6   :  { %1961 = vmatprep.subr.bf16.mxu0 %v2193_v0 }
0x1da9   :  { %1962 = vmatpush3.bf16.msra.mxu0 %v2586_v26 }
0x1daa   :  { %1975 = vmatprep.subr.bf16.mxu0 %v2193_v0 }
0x1e64   :  { %v1234_v34 = vpop.f32.mrf.mxu0 }
0x1e65   :  { %v1240_v25 = vadd.f32 %v1234_v34, %v1028_v31 }
0x1e66   :  { %v1949_v28 = vpop.f32.mrf.mxu0 }
0x1e67   :  { %2097 = vtanh.f32 %v1240_v25  ;;  %v1759_v39 = vmul.f32 -1.442695, %v1240_v25 }
0x1e68   :  { %v1237_v33 = vpop.f32.mrf.mxu0 }
0x1e69   :  { %2099 = vpow2.f32 %v1759_v39 }
0x1e6a   :  { %v1950_v37 = vpop.f32.mrf.mxu0 }
0x1e74   :  { %v2098_v38 = vpop.eup %2097 }
0x1e75   :  { %1250 = vrot.lane.b32.xlu1 %v2098_v38, %s2190_s21 }
0x1e76   :  { %v2100_v40 = vpop.eup %2099 }
0x1e77   :  { %v1244_v41 = vadd.f32 1.0, %v2100_v40 }
0x1e79   :  { %2101 = vrcp.f32 %v1244_v41 }
0x1e86   :  { %v2102_v4 = vpop.eup %2101 }
0x1e87   :  { %v1248_v22 = vmul.f32 %v2102_v4, %v1186_v29 }
0x1ee7   :  { %v1251_v42 = vpop.permute.xlu1 %1250 }
0x1ee8   :  { %v1253_v43 = vmul.f32 %v2102_v4, %v1251_v42 }
0x1eea   :  { %1255 = vrot.lane.b32.xlu0 %v1253_v43, %s2195_s25 }
0x1f5c   :  { %v1256_v36 = vpop.permute.xlu0 %1255 }
0x1f5d   :  { %v1258_v44 = vadd.f32 %v1256_v36, %v1248_v22 }
0x1f5f   :  { %2103 = vtanh.f32 %v1258_v44 }
0x1f6c   :  { %v2104_v5 = vpop.eup %2103 }
0x1f6d   :  { %1261 = vrot.lane.b32.xlu1 %v2104_v5, %s2190_s21 }
0x1fdf   :  { %v1262_v45 = vpop.permute.xlu1 %1261 }
0x1fe0   :  { %v2648_v46 = vmul.f32 %v2102_v4, %v1262_v45 }
0x1fe2   :  { %v1265_v47 = vpack.c.bf16 %v2648_v46, %v2648_v46 }
0x1fe4   :  { %1267 = vrot.lane.b32.xlu0 %v1265_v47, %s2195_s25 }
0x2056   :  { %v1268_v27 = vpop.permute.xlu0 %1267 }
0x2057   :  { %1956 = vmatmul.mubr.msk.bf16.vlgmr.msra.gmra.mxu1 %vm124_vm1, %v1268_v27 }
0x2058   :  { %1968 = vmatpush3.bf16.msra.mxu1 %v2573_v58  ;;  %1971 = vmatprep.mubr.msk.bf16.mxu1 %vm2194_vm0, %v2193_v0 }
0x2059   :  { %1969 = vmatprep.subr.bf16.mxu1 %v2193_v0 }
0x205c   :  { %1970 = vmatpush3.bf16.msra.mxu1 %v2586_v26 }
0x205d   :  { %1983 = vmatprep.subr.bf16.mxu1 %v2193_v0 }
0x2117   :  { %v1306_v48 = vpop.f32.mrf.mxu1 }
0x2118   :  { %v1312_v50 = vadd.f32 %v1306_v48, %v1031_v32 }
0x2119   :  { %v1957_v51 = vpop.f32.mrf.mxu1 }
0x211a   :  { %2105 = vtanh.f32 %v1312_v50  ;;  %v1761_v56 = vmul.f32 -1.442695, %v1312_v50 }
0x211b   :  { %v1309_v53 = vpop.f32.mrf.mxu1 }
0x211c   :  { %2107 = vpow2.f32 %v1761_v56 }
0x211d   :  { %v1958_v54 = vpop.f32.mrf.mxu1 }
0x2127   :  { %v2106_v55 = vpop.eup %2105 }
0x2128   :  { %1322 = vrot.lane.b32.xlu1 %v2106_v55, %s2190_s21 }
0x2129   :  { %v2108_v57 = vpop.eup %2107 }
0x212a   :  { %v1316_v59 = vadd.f32 1.0, %v2108_v57 }
0x212c   :  { %2109 = vrcp.f32 %v1316_v59 }
0x2139   :  { %v2110_v60 = vpop.eup %2109 }
0x213a   :  { %v1320_v15 = vmul.f32 %v2110_v60, %v1258_v44 }
0x219a   :  { %v1323_v61 = vpop.permute.xlu1 %1322 }
0x219b   :  { %v1325_v62 = vmul.f32 %v2110_v60, %v1323_v61 }
0x219d   :  { %1327 = vrot.lane.b32.xlu0 %v1325_v62, %s2195_s25 }
0x220f   :  { %v1328_v16 = vpop.permute.xlu0 %1327 }
0x2210   :  { %v1330_v17 = vadd.f32 %v1328_v16, %v1320_v15 }
0x2212   :  { %2111 = vtanh.f32 %v1330_v17 }
0x221f   :  { %v2112_v29 = vpop.eup %2111 }
0x2220   :  { %1333 = vrot.lane.b32.xlu1 %v2112_v29, %s2190_s21 }
0x2292   :  { %v1334_v35 = vpop.permute.xlu1 %1333 }
0x2293   :  { %v2667_v18 = vmul.f32 %v2110_v60, %v1334_v35 }
0x2295   :  { %v1337_v21 = vpack.c.bf16 %v2667_v18, %v2667_v18 }
0x2297   :  { %1339 = vrot.lane.b32.xlu0 %v1337_v21, %s2195_s25 }
0x2309   :  { %v1340_v30 = vpop.permute.xlu0 %1339 }
0x230a   :  { %1964 = vmatmul.mubr.msk.bf16.vlgmr.msra.gmra.mxu0 %vm124_vm1, %v1340_v30 }
0x230b   :  { %1976 = vmatpush3.bf16.msra.mxu0 %v2573_v58  ;;  %1979 = vmatprep.mubr.msk.bf16.mxu0 %vm2194_vm0, %v2193_v0 }
0x230c   :  { %1977 = vmatprep.subr.bf16.mxu0 %v2193_v0 }
0x230f   :  { %1978 = vmatpush3.bf16.msra.mxu0 %v2586_v26 }
0x23ca   :  { %v1378_v31 = vpop.f32.mrf.mxu0 }
0x23cb   :  { %v1384_v34 = vadd.f32 %v1378_v31, %v1032_v13 }
0x23cc   :  { %v1965_v25 = vpop.f32.mrf.mxu0 }
0x23cd   :  { %2113 = vtanh.f32 %v1384_v34  ;;  %v1763_v38 = vmul.f32 -1.442695, %v1384_v34 }
0x23ce   :  { %v1381_v28 = vpop.f32.mrf.mxu0 }
0x23cf   :  { %2115 = vpow2.f32 %v1763_v38 }
0x23d0   :  { %v1966_v33 = vpop.f32.mrf.mxu0 }
0x23da   :  { %v2114_v37 = vpop.eup %2113 }
0x23db   :  { %1394 = vrot.lane.b32.xlu1 %v2114_v37, %s2190_s21 }
0x23dc   :  { %v2116_v39 = vpop.eup %2115 }
0x23dd   :  { %v1388_v40 = vadd.f32 1.0, %v2116_v39 }
0x23df   :  { %2117 = vrcp.f32 %v1388_v40 }
0x23ec   :  { %v2118_v41 = vpop.eup %2117 }
0x23ed   :  { %v1392_v43 = vmul.f32 %v2118_v41, %v1330_v17 }
0x244d   :  { %v1395_v4 = vpop.permute.xlu1 %1394 }
0x244e   :  { %v1397_v42 = vmul.f32 %v2118_v41, %v1395_v4 }
0x2450   :  { %1399 = vrot.lane.b32.xlu0 %v1397_v42, %s2195_s25 }
0x24c2   :  { %v1400_v9 = vpop.permute.xlu0 %1399 }
0x24c3   :  { %v1402_v10 = vadd.f32 %v1400_v9, %v1392_v43 }
0x24c5   :  { %2119 = vtanh.f32 %v1402_v10 }
0x24d2   :  { %v2120_v13 = vpop.eup %2119 }
0x24d3   :  { %1405 = vrot.lane.b32.xlu1 %v2120_v13, %s2190_s21 }
0x2545   :  { %v1406_v22 = vpop.permute.xlu1 %1405 }
0x2546   :  { %v2686_v36 = vmul.f32 %v2118_v41, %v1406_v22 }
0x2548   :  { %v1409_v44 = vpack.c.bf16 %v2686_v36, %v2686_v36 }
0x254a   :  { %1411 = vrot.lane.b32.xlu0 %v1409_v44, %s2195_s25 }
0x25bc   :  { %v1412_v5 = vpop.permute.xlu0 %1411 }
0x25bd   :  { %1972 = vmatmul.mubr.msk.bf16.vlgmr.msra.gmra.mxu1 %vm124_vm1, %v1412_v5 }
0x25be   :  { %1984 = vmatpush3.bf16.msra.mxu1 %v2573_v58  ;;  %1987 = vmatprep.mubr.msk.bf16.mxu1 %vm2194_vm0, %v2193_v0 }
0x25bf   :  { %1985 = vmatprep.subr.bf16.mxu1 %v2193_v0 }
0x25c2   :  { %1986 = vmatpush3.bf16.msra.mxu1 %v2586_v26 }
0x267d   :  { %v1450_v45 = vpop.f32.mrf.mxu1 }
0x267e   :  { %v1456_v47 = vadd.f32 %v1450_v45, %v1033_v11 }
0x267f   :  { %v1973_v27 = vpop.f32.mrf.mxu1 }
0x2680   :  { %2121 = vtanh.f32 %v1456_v47  ;;  %v1765_v58 = vmul.f32 -1.442695, %v1456_v47 }
0x2681   :  { %v1453_v32 = vpop.f32.mrf.mxu1 }
0x2682   :  { %2123 = vpow2.f32 %v1765_v58 }
0x2683   :  { %v1974_v48 = vpop.f32.mrf.mxu1 }
0x268d   :  { %v2122_v50 = vpop.eup %2121 }
0x268e   :  { %1466 = vrot.lane.b32.xlu1 %v2122_v50, %s2190_s21 }
0x268f   :  { %v2124_v51 = vpop.eup %2123 }
0x2690   :  { %v1460_v0 = vadd.f32 1.0, %v2124_v51 }
0x2692   :  { %2125 = vrcp.f32 %v1460_v0 }
0x269f   :  { %v2126_v26 = vpop.eup %2125 }
0x26a0   :  { %v1464_v55 = vmul.f32 %v2126_v26, %v1402_v10 }
0x2700   :  { %v1467_v53 = vpop.permute.xlu1 %1466 }
0x2701   :  { %v1469_v54 = vmul.f32 %v2126_v26, %v1467_v53 }
0x2703   :  { %1471 = vrot.lane.b32.xlu0 %v1469_v54, %s2195_s25 }
0x2775   :  { %v1472_v6 = vpop.permute.xlu0 %1471 }
0x2776   :  { %v1474_v7 = vadd.f32 %v1472_v6, %v1464_v55 }
0x2778   :  { %2127 = vtanh.f32 %v1474_v7 }
0x2785   :  { %v2128_v11 = vpop.eup %2127 }
0x2786   :  { %1477 = vrot.lane.b32.xlu1 %v2128_v11, %s2190_s21 }
0x27f8   :  { %v1478_v56 = vpop.permute.xlu1 %1477 }
0x27f9   :  { %v1480_v57 = vmul.f32 %v2126_v26, %v1478_v56 }
0x27fb   :  { %v1481_v59 = vpack.c.bf16 %v1480_v57, %v1480_v57 }
0x27fd   :  { %1483 = vrot.lane.b32.xlu0 %v1481_v59, %s2195_s25 }
0x286f   :  { %v1484_v60 = vpop.permute.xlu0 %1483 }
0x2870   :  { %1980 = vmatmul.mubr.msk.bf16.vlgmr.msra.gmra.mxu0 %vm124_vm1, %v1484_v60 }
0x2930   :  { %v1522_v61 = vpop.f32.mrf.mxu0 }
0x2931   :  { %v1528_v62 = vadd.f32 %v1522_v61, %v1034_v12 }
0x2932   :  { %v1981_v15 = vpop.f32.mrf.mxu0 }
0x2933   :  { %2129 = vtanh.f32 %v1528_v62  ;;  %v1767_v35 = vmul.f32 -1.442695, %v1528_v62 }
0x2934   :  { %v1525_v16 = vpop.f32.mrf.mxu0 }
0x2935   :  { %2131 = vpow2.f32 %v1767_v35 }
0x2936   :  { %v1982_v17 = vpop.f32.mrf.mxu0 }
0x2940   :  { %v2130_v29 = vpop.eup %2129 }
0x2941   :  { %1538 = vrot.lane.b32.xlu1 %v2130_v29, %s2190_s21 }
0x2942   :  { %v2132_v21 = vpop.eup %2131 }
0x2943   :  { %v1532_v30 = vadd.f32 1.0, %v2132_v21 }
0x2945   :  { %2133 = vrcp.f32 %v1532_v30 }
0x2952   :  { %v2134_v31 = vpop.eup %2133 }
0x2953   :  { %v1536_v28 = vmul.f32 %v2134_v31, %v1474_v7 }
0x29b3   :  { %v1539_v34 = vpop.permute.xlu1 %1538 }
0x29b4   :  { %v1541_v25 = vmul.f32 %v2134_v31, %v1539_v34 }
0x29b6   :  { %1543 = vrot.lane.b32.xlu0 %v1541_v25, %s2195_s25 }
0x2a28   :  { %v1544_v2 = vpop.permute.xlu0 %1543 }
0x2a29   :  { %v1546_v3 = vadd.f32 %v1544_v2, %v1536_v28 }
0x2a2b   :  { %2135 = vtanh.f32 %v1546_v3 }
0x2a38   :  { %v2136_v12 = vpop.eup %2135 }
0x2a39   :  { %1549 = vrot.lane.b32.xlu1 %v2136_v12, %s2190_s21 }
0x2aab   :  { %v1550_v33 = vpop.permute.xlu1 %1549 }
0x2aac   :  { %v1552_v37 = vmul.f32 %v2134_v31, %v1550_v33 }
0x2aae   :  { %v1553_v38 = vpack.c.bf16 %v1552_v37, %v1552_v37 }
0x2ab0   :  { %1555 = vrot.lane.b32.xlu0 %v1553_v38, %s2195_s25 }
0x2b22   :  { %v1556_v39 = vpop.permute.xlu0 %1555 }
0x2b23   :  { %1988 = vmatmul.mubr.msk.bf16.vlgmr.msra.gmra.mxu1 %vm124_vm1, %v1556_v39 }
0x2be3   :  { %v1594_v40 = vpop.f32.mrf.mxu1 }
0x2be4   :  { %v1600_v41 = vadd.f32 %v1594_v40, %v1035_v8 }
0x2be5   :  { %v1989_v4 = vpop.f32.mrf.mxu1 }
0x2be6   :  { %2137 = vtanh.f32 %v1600_v41  ;;  %v1769_v10 = vmul.f32 -1.442695, %v1600_v41 }
0x2be7   :  { %v1597_v42 = vpop.f32.mrf.mxu1 }
0x2be8   :  { %2139 = vpow2.f32 %v1769_v10 }
0x2be9   :  { %v1990_v43 = vpop.f32.mrf.mxu1 }
0x2bf3   :  { %v2138_v9 = vpop.eup %2137 }
0x2bf4   :  { %1610 = vrot.lane.b32.xlu1 %v2138_v9, %s2190_s21 }
0x2bf5   :  { %v2140_v13 = vpop.eup %2139 }
0x2bf6   :  { %v1604_v22 = vadd.f32 1.0, %v2140_v13 }
0x2bf8   :  { %2141 = vrcp.f32 %v1604_v22 }
0x2c05   :  { %v2142_v44 = vpop.eup %2141 }
0x2c06   :  { %v1608_v20 = vmul.f32 %v2142_v44, %v1546_v3 }
0x2c66   :  { %v1611_v5 = vpop.permute.xlu1 %1610 }
0x2c67   :  { %v1613_v45 = vmul.f32 %v2142_v44, %v1611_v5 }
0x2c69   :  { %1615 = vrot.lane.b32.xlu0 %v1613_v45, %s2195_s25 }
0x2c6d   :  { %1635 = vrot.lane.b32.xlu0 %v2629_v19, %s2195_s25 }
0x2c71   :  { %1644 = vrot.lane.b32.xlu0 %v2648_v46, %s2195_s25 }
0x2c75   :  { %1626 = vrot.lane.b32.xlu0 %v2610_v23, %s2195_s25 }
0x2c79   :  { %1653 = vrot.lane.b32.xlu0 %v2667_v18, %s2195_s25 }
0x2cdb   :  { %v1616_v63 = vpop.permute.xlu0 %1615 }
0x2cdc   :  { %v1618_v1 = vadd.f32 %v1616_v63, %v1608_v20 }
0x2cde   :  { %2143 = vtanh.f32 %v1618_v1 }
0x2cdf   :  { %v1636_v46 = vpop.permute.xlu0 %1635 }
0x2ce3   :  { %v1645_v27 = vpop.permute.xlu0 %1644 }
0x2ce7   :  { %v1627_v51 = vpop.permute.xlu0 %1626 }
0x2ceb   :  { %v2144_v8 = vpop.eup %2143  ;;  %v1654_v26 = vpop.permute.xlu0 %1653 }
0x2cec   :  { %1621 = vrot.lane.b32.xlu1 %v2144_v8, %s2190_s21 }
0x2cf0   :  { %1639 = vrot.lane.b32.xlu1 %v1552_v37, %s2195_s25 }
0x2cf4   :  { %1648 = vrot.lane.b32.xlu1 %v1480_v57, %s2195_s25 }
0x2d5e   :  { %v1622_v19 = vpop.permute.xlu1 %1621 }
0x2d5f   :  { %v1624_v47 = vmul.f32 %v2142_v44, %v1622_v19 }
0x2d61   :  { %1630 = vrot.lane.b32.xlu1 %v1624_v47, %s2195_s25 }
0x2d62   :  { %v1640_v23 = vpop.permute.xlu1 %1639 }
0x2d63   :  { %v1642_v18 = vsel %vm93_vm3, %v1636_v46, %v1640_v23  ;;  %v1663_v58 = vsel %vm93_vm3, %v1640_v23, %v1636_v46 }
0x2d64   :  { %1666 = vrot.lane.b32.xlu0 %v1642_v18, %s2195_s25 }
0x2d65   :  { %1657 = vrot.lane.b32.xlu1 %v2686_v36, %s2195_s25 }
0x2d66   :  { %v1649_v32 = vpop.permute.xlu1 %1648 }
0x2d67   :  { %v1651_v48 = vsel %vm93_vm3, %v1645_v27, %v1649_v32  ;;  %v1662_v50 = vsel %vm93_vm3, %v1649_v32, %v1645_v27 }
0x2d68   :  { %1670 = vrot.lane.b32.xlu0 %v1651_v48, %s2190_s21 }
0x2d69   :  { %1678 = vrot.lane.b32.xlu1 %v1662_v50, %s2195_s25 }
0x2d6d   :  { %1682 = vrot.lane.b32.xlu1 %v1663_v58, %s2190_s21 }
0x2dd3   :  { %v1631_v0 = vpop.permute.xlu1 %1630 }
0x2dd4   :  { %v1664_v36 = vsel %vm93_vm3, %v1631_v0, %v1627_v51  ;;  %v1633_v57 = vsel %vm93_vm3, %v1627_v51, %v1631_v0 }
0x2dd5   :  { %1686 = vrot.lane.b32.xlu1 %v1664_v36, %s2197_s11 }
0x2dd6   :  { %v1667_v7 = vpop.permute.xlu0 %1666 }
0x2dd7   :  { %v1658_v53 = vpop.permute.xlu1 %1657  ;;  %v1689_v60 = vsel %vm124_vm1, %v1633_v57, %v1667_v7 }
0x2dd8   :  { %v1661_v54 = vsel %vm93_vm3, %v1658_v53, %v1654_v26  ;;  %v1660_v55 = vsel %vm93_vm3, %v1654_v26, %v1658_v53 }
0x2dd9   :  { %1008 = vrot.lane.b32.xlu1 %v2543_v24, %s2190_s21  ;;  %1674 = vrot.lane.b32.xlu0 %v1660_v55, %s2197_s11 }
0x2dda   :  { %v1671_v56 = vpop.permute.xlu0 %1670 }
0x2ddb   :  { %v1679_v6 = vpop.permute.xlu1 %1678  ;;  %v1690_v24 = vsel %vm1011_vm4, %v1689_v60, %v1671_v56 }
0x2ddc   :  { %v1692_v61 = vsel %vm124_vm1, %v1661_v54, %v1679_v6 }
0x2ddd   :  { %1004 = vrot.lane.b32.xlu0 %v2552_v49, %s2197_s11 }
0x2ddf   :  { %v1683_v11 = vpop.permute.xlu1 %1682 }
0x2de0   :  { %v1693_v62 = vsel %vm1011_vm4, %v1692_v61, %v1683_v11 }
0x2e47   :  { %v1687_v59 = vpop.permute.xlu1 %1686 }
0x2e48   :  { %v1694_v16 = vsel %vm1013_vm5, %v1693_v62, %v1687_v59 }
0x2e4b   :  { %v1675_v15 = vpop.permute.xlu0 %1674  ;;  %v1009_v35 = vpop.permute.xlu1 %1008 }
0x2e4c   :  { %v1691_v17 = vsel %vm1013_vm5, %v1690_v24, %v1675_v15 }
0x2e4d   :  { %v1697_v49 = vcombine.low %v1691_v17, %v1694_v16 }
0x2e4f   :  { %1770 = vst.sshfl [vmem:[%s2788_s14] sm:$0x33 pattern:$0x76325410] %v1697_v49  ;;  %v1005_v29 = vpop.permute.xlu0 %1004 }
0x2e50   :  { %v1012_v14 = vsel %vm1011_vm4, %v2564_v52, %v1005_v29 }
0x2e51   :  { %v1014_v21 = vsel %vm1013_vm5, %v1012_v14, %v1009_v35 }
0x2e52   :  { %1015 = vst [vmem:[%s2789_s15] sm:$0x3] %v1014_v21 }
0x2e53   :  { %1715 = vsyncpa [#allocation5], 1 }
0x2e54   :  { %1716 = vsyncpa [#allocation7], 1 }

</bundles_post_ra>
